<compile_context>
chip_gen: v6e
topology: v6e:2x2x1
jax: 0.10.0
libtpu: 0.0.40
codegen_flags: <defaults>
</compile_context>

<pallas_src>
import jax
import jax.numpy as jnp
from jax.experimental import pallas as pl
from jax.experimental.pallas import tpu as pltpu

H = 64    # LSTM hidden size
GP = 128  # lane-padded per-gate width (each gate owns a full 128-lane slot)


def _sigmoid(x):
    # sigmoid(x) = 0.5*tanh(0.5*x) + 0.5  -> single EUP transcendental.
    return 0.5 * jnp.tanh(0.5 * x) + 0.5


def lstm_kernel(xg_ref, w_hh_ref, w_fc_ref, b_fc_ref, out_ref):
    # xg_ref:   (T, B, 4*GP)  precomputed x @ W_ih^T + (b_ih + b_hh), gate-padded
    # w_hh_ref: (GP, 4*GP)    recurrent weight, h-rows / gate-cols zero padded
    # w_fc_ref: (1, GP)       final Linear weight as a lane row (zero padded)
    # b_fc_ref: (1, 1)
    # out_ref:  (B, 1)
    T, B = xg_ref.shape[0], xg_ref.shape[1]

    # h / c live in vregs (loop-carried); (B, 128) f32 pads to a single (8, 128)
    # vreg each, so there is no register-pressure cost and no VMEM round trips
    # inside the serial recurrence.
    h = jnp.zeros((B, GP), jnp.float32)
    c = jnp.zeros((B, GP), jnp.float32)

    # T is static and small -> full unroll exposes the whole body to the
    # scheduler.  TODO(synk): for long T, stream xg along a T grid axis with
    # Buffered(2) blocks and switch to lax.fori_loop(..., unroll=k).
    for t in range(T):
        gates = (jnp.dot(h, w_hh_ref[...], preferred_element_type=jnp.float32)
                 + xg_ref[t])                                    # (B, 4*GP)
        # PyTorch gate order: i, f, g, o.  Each slice is a 128-lane aligned
        # whole-vreg extract thanks to the gate padding.
        i_g = _sigmoid(gates[:, 0 * GP:1 * GP])
        f_g = _sigmoid(gates[:, 1 * GP:2 * GP])
        g_g = jnp.tanh(gates[:, 2 * GP:3 * GP])
        o_g = _sigmoid(gates[:, 3 * GP:4 * GP])
        c = f_g * c + i_g * g_g
        h = o_g * jnp.tanh(c)
        # Padded lanes stay exactly zero: gate pre-activations there are 0, so
        # g = tanh(0) = 0, c stays 0, h = sigmoid(0)*tanh(0) = 0; they never
        # pollute the recurrent matmul or the final projection.

    # Final Linear(64, 1): VPU multiply + lane reduction (padded lanes of h and
    # w_fc are zero, so they contribute nothing).
    out_ref[...] = (jnp.sum(h * w_fc_ref[...], axis=-1, keepdims=True)
                    + b_fc_ref[...]).astype(out_ref.dtype)


def lstm_forward(x, w_ih, w_hh, b_ih, b_hh, w_fc, b_fc):
    """x: (B, T, 1) float32 -> (B, 1) float32 (matches PyTorch LSTM + Linear)."""
    B, T, _ = x.shape
    x = x.astype(jnp.float32)

    # Pack weights so each gate owns a full 128-lane slot:
    #   columns [k*GP, k*GP + H) hold gate k (order i, f, g, o), rest zero.
    w_ih_t = w_ih.T.astype(jnp.float32)                      # (1, 4H)
    w_hh_t = w_hh.T.astype(jnp.float32)                      # (H, 4H)
    b = (b_ih + b_hh).astype(jnp.float32)                    # (4H,)

    w_ih_pad = jnp.zeros((1, 4 * GP), jnp.float32)
    w_hh_pad = jnp.zeros((GP, 4 * GP), jnp.float32)
    b_pad = jnp.zeros((1, 4 * GP), jnp.float32)
    for k in range(4):
        w_ih_pad = w_ih_pad.at[:, k * GP:k * GP + H].set(w_ih_t[:, k * H:(k + 1) * H])
        w_hh_pad = w_hh_pad.at[:H, k * GP:k * GP + H].set(w_hh_t[:, k * H:(k + 1) * H])
        b_pad = b_pad.at[:, k * GP:k * GP + H].set(b[k * H:(k + 1) * H])

    # Hoisted input projection: one (B*T, 1) x (1, 4*GP) outer product + bias,
    # done once outside the serial recurrence.
    xg = (x.reshape(B * T, 1) @ w_ih_pad + b_pad).reshape(B, T, 4 * GP)
    xg = jnp.transpose(xg, (1, 0, 2))                        # (T, B, 4*GP)

    w_fc_row = jnp.zeros((1, GP), jnp.float32).at[:, :H].set(
        w_fc.reshape(1, H).astype(jnp.float32))              # (1, GP)
    b_fc2 = b_fc.reshape(1, 1).astype(jnp.float32)           # (1, 1)

    vmem = pl.BlockSpec(memory_space=pltpu.MemorySpace.VMEM)
    return pl.pallas_call(
        lstm_kernel,
        out_shape=jax.ShapeDtypeStruct((B, 1), jnp.float32),
        in_specs=[vmem] * 4,
        out_specs=vmem,
    )(xg, w_hh_pad, w_fc_row, b_fc2)


def _reference(x, w_ih, w_hh, b_ih, b_hh, w_fc, b_fc):
    """Pure-JAX reference matching torch.nn.LSTM + nn.Linear semantics."""
    B, T, _ = x.shape
    h = jnp.zeros((B, H), jnp.float32)
    c = jnp.zeros((B, H), jnp.float32)
    for t in range(T):
        g = x[:, t, :] @ w_ih.T + b_ih + h @ w_hh.T + b_hh
        i = jax.nn.sigmoid(g[:, 0 * H:1 * H])
        f = jax.nn.sigmoid(g[:, 1 * H:2 * H])
        gg = jnp.tanh(g[:, 2 * H:3 * H])
        o = jax.nn.sigmoid(g[:, 3 * H:4 * H])
        c = f * c + i * gg
        h = o * jnp.tanh(c)
    return h @ w_fc.T + b_fc


if __name__ == "__main__":
    key = jax.random.PRNGKey(0)
    B, T = 2, 8
    k = jax.random.split(key, 8)
    bound = 1.0 / jnp.sqrt(jnp.float32(H))  # PyTorch default uniform init range

    x = jax.random.normal(k[0], (B, T, 1), jnp.float32)
    w_ih = jax.random.uniform(k[1], (4 * H, 1), jnp.float32, -bound, bound)
    w_hh = jax.random.uniform(k[2], (4 * H, H), jnp.float32, -bound, bound)
    b_ih = jax.random.uniform(k[3], (4 * H,), jnp.float32, -bound, bound)
    b_hh = jax.random.uniform(k[4], (4 * H,), jnp.float32, -bound, bound)
    w_fc = jax.random.uniform(k[5], (1, H), jnp.float32, -bound, bound)
    b_fc = jax.random.uniform(k[6], (1,), jnp.float32, -bound, bound)

    fwd = jax.jit(lstm_forward)
    out = fwd(x, w_ih, w_hh, b_ih, b_hh, w_fc, b_fc)
    out = jax.block_until_ready(out)

    ref = _reference(x, w_ih, w_hh, b_ih, b_hh, w_fc, b_fc)
    assert out.shape == (B, 1)
    assert jnp.allclose(out, ref, atol=1e-5, rtol=1e-5)
    print("KERNEL_OK")
</pallas_src>

<mosaic_0001>
module attributes {stable_mosaic.version = 11 : i64} {
  func.func @lstm_kernel(%arg0: memref<8x2x512xf32, #tpu.memory_space<vmem>>, %arg1: memref<128x512xf32, #tpu.memory_space<vmem>>, %arg2: memref<1x128xf32, #tpu.memory_space<vmem>>, %arg3: memref<1x1xf32, #tpu.memory_space<vmem>>, %arg4: memref<2x1xf32, #tpu.memory_space<vmem>>) attributes {dimension_semantics = [], scalar_prefetch = 0 : i64, scratch_operands = 0 : i64, tpu.core_type = #tpu.core_type<tc>} {
    %cst = arith.constant 0.000000e+00 : f32
    %0 = vector.broadcast %cst : f32 to vector<2x128xf32>
    %cst_0 = arith.constant 0.000000e+00 : f32
    %1 = vector.broadcast %cst_0 : f32 to vector<2x128xf32>
    %c0 = arith.constant 0 : index
    %c0_1 = arith.constant 0 : index
    %2 = vector.load %arg1[%c0, %c0_1] : memref<128x512xf32, #tpu.memory_space<vmem>>, vector<128x512xf32>
    %cst_2 = arith.constant dense<0.000000e+00> : vector<2x512xf32>
    %3 = tpu.matmul %0, %2, %cst_2 {dimension_numbers = #tpu.dot_dimension_numbers<[1], [0], [0], [1], [0, 0, 1, 1], [], []>} : vector<2x128xf32>, vector<128x512xf32>, vector<2x512xf32> -> vector<2x512xf32>
    %c0_3 = arith.constant 0 : index
    %c0_4 = arith.constant 0 : index
    %c0_5 = arith.constant 0 : index
    %4 = vector.load %arg0[%c0_3, %c0_4, %c0_5] : memref<8x2x512xf32, #tpu.memory_space<vmem>>, vector<1x2x512xf32>
    %5 = vector.shape_cast %4 : vector<1x2x512xf32> to vector<2x512xf32>
    %6 = arith.addf %3, %5 : vector<2x512xf32>
    %7 = vector.extract_strided_slice %6 {offsets = [0, 0], sizes = [2, 128], strides = [1, 1]} : vector<2x512xf32> to vector<2x128xf32>
    %cst_6 = arith.constant 5.000000e-01 : f32
    %8 = vector.broadcast %cst_6 : f32 to vector<2x128xf32>
    %9 = arith.mulf %8, %7 : vector<2x128xf32>
    %10 = math.tanh %9 : vector<2x128xf32>
    %cst_7 = arith.constant 5.000000e-01 : f32
    %11 = vector.broadcast %cst_7 : f32 to vector<2x128xf32>
    %12 = arith.mulf %11, %10 : vector<2x128xf32>
    %cst_8 = arith.constant 5.000000e-01 : f32
    %13 = vector.broadcast %cst_8 : f32 to vector<2x128xf32>
    %14 = arith.addf %12, %13 : vector<2x128xf32>
    %15 = vector.extract_strided_slice %6 {offsets = [0, 128], sizes = [2, 128], strides = [1, 1]} : vector<2x512xf32> to vector<2x128xf32>
    %cst_9 = arith.constant 5.000000e-01 : f32
    %16 = vector.broadcast %cst_9 : f32 to vector<2x128xf32>
    %17 = arith.mulf %16, %15 : vector<2x128xf32>
    %18 = math.tanh %17 : vector<2x128xf32>
    %cst_10 = arith.constant 5.000000e-01 : f32
    %19 = vector.broadcast %cst_10 : f32 to vector<2x128xf32>
    %20 = arith.mulf %19, %18 : vector<2x128xf32>
    %cst_11 = arith.constant 5.000000e-01 : f32
    %21 = vector.broadcast %cst_11 : f32 to vector<2x128xf32>
    %22 = arith.addf %20, %21 : vector<2x128xf32>
    %23 = vector.extract_strided_slice %6 {offsets = [0, 256], sizes = [2, 128], strides = [1, 1]} : vector<2x512xf32> to vector<2x128xf32>
    %24 = math.tanh %23 : vector<2x128xf32>
    %25 = vector.extract_strided_slice %6 {offsets = [0, 384], sizes = [2, 128], strides = [1, 1]} : vector<2x512xf32> to vector<2x128xf32>
    %cst_12 = arith.constant 5.000000e-01 : f32
    %26 = vector.broadcast %cst_12 : f32 to vector<2x128xf32>
    %27 = arith.mulf %26, %25 : vector<2x128xf32>
    %28 = math.tanh %27 : vector<2x128xf32>
    %cst_13 = arith.constant 5.000000e-01 : f32
    %29 = vector.broadcast %cst_13 : f32 to vector<2x128xf32>
    %30 = arith.mulf %29, %28 : vector<2x128xf32>
    %cst_14 = arith.constant 5.000000e-01 : f32
    %31 = vector.broadcast %cst_14 : f32 to vector<2x128xf32>
    %32 = arith.addf %30, %31 : vector<2x128xf32>
    %33 = arith.mulf %22, %1 : vector<2x128xf32>
    %34 = arith.mulf %14, %24 : vector<2x128xf32>
    %35 = arith.addf %33, %34 : vector<2x128xf32>
    %36 = math.tanh %35 : vector<2x128xf32>
    %37 = arith.mulf %32, %36 : vector<2x128xf32>
    %c0_15 = arith.constant 0 : index
    %c0_16 = arith.constant 0 : index
    %38 = vector.load %arg1[%c0_15, %c0_16] : memref<128x512xf32, #tpu.memory_space<vmem>>, vector<128x512xf32>
    %cst_17 = arith.constant dense<0.000000e+00> : vector<2x512xf32>
    %39 = tpu.matmul %37, %38, %cst_17 {dimension_numbers = #tpu.dot_dimension_numbers<[1], [0], [0], [1], [0, 0, 1, 1], [], []>} : vector<2x128xf32>, vector<128x512xf32>, vector<2x512xf32> -> vector<2x512xf32>
    %c1 = arith.constant 1 : index
    %c0_18 = arith.constant 0 : index
    %c0_19 = arith.constant 0 : index
    %40 = vector.load %arg0[%c1, %c0_18, %c0_19] : memref<8x2x512xf32, #tpu.memory_space<vmem>>, vector<1x2x512xf32>
    %41 = vector.shape_cast %40 : vector<1x2x512xf32> to vector<2x512xf32>
    %42 = arith.addf %39, %41 : vector<2x512xf32>
    %43 = vector.extract_strided_slice %42 {offsets = [0, 0], sizes = [2, 128], strides = [1, 1]} : vector<2x512xf32> to vector<2x128xf32>
    %cst_20 = arith.constant 5.000000e-01 : f32
    %44 = vector.broadcast %cst_20 : f32 to vector<2x128xf32>
    %45 = arith.mulf %44, %43 : vector<2x128xf32>
    %46 = math.tanh %45 : vector<2x128xf32>
    %cst_21 = arith.constant 5.000000e-01 : f32
    %47 = vector.broadcast %cst_21 : f32 to vector<2x128xf32>
    %48 = arith.mulf %47, %46 : vector<2x128xf32>
    %cst_22 = arith.constant 5.000000e-01 : f32
    %49 = vector.broadcast %cst_22 : f32 to vector<2x128xf32>
    %50 = arith.addf %48, %49 : vector<2x128xf32>
    %51 = vector.extract_strided_slice %42 {offsets = [0, 128], sizes = [2, 128], strides = [1, 1]} : vector<2x512xf32> to vector<2x128xf32>
    %cst_23 = arith.constant 5.000000e-01 : f32
    %52 = vector.broadcast %cst_23 : f32 to vector<2x128xf32>
    %53 = arith.mulf %52, %51 : vector<2x128xf32>
    %54 = math.tanh %53 : vector<2x128xf32>
    %cst_24 = arith.constant 5.000000e-01 : f32
    %55 = vector.broadcast %cst_24 : f32 to vector<2x128xf32>
    %56 = arith.mulf %55, %54 : vector<2x128xf32>
    %cst_25 = arith.constant 5.000000e-01 : f32
    %57 = vector.broadcast %cst_25 : f32 to vector<2x128xf32>
    %58 = arith.addf %56, %57 : vector<2x128xf32>
    %59 = vector.extract_strided_slice %42 {offsets = [0, 256], sizes = [2, 128], strides = [1, 1]} : vector<2x512xf32> to vector<2x128xf32>
    %60 = math.tanh %59 : vector<2x128xf32>
    %61 = vector.extract_strided_slice %42 {offsets = [0, 384], sizes = [2, 128], strides = [1, 1]} : vector<2x512xf32> to vector<2x128xf32>
    %cst_26 = arith.constant 5.000000e-01 : f32
    %62 = vector.broadcast %cst_26 : f32 to vector<2x128xf32>
    %63 = arith.mulf %62, %61 : vector<2x128xf32>
    %64 = math.tanh %63 : vector<2x128xf32>
    %cst_27 = arith.constant 5.000000e-01 : f32
    %65 = vector.broadcast %cst_27 : f32 to vector<2x128xf32>
    %66 = arith.mulf %65, %64 : vector<2x128xf32>
    %cst_28 = arith.constant 5.000000e-01 : f32
    %67 = vector.broadcast %cst_28 : f32 to vector<2x128xf32>
    %68 = arith.addf %66, %67 : vector<2x128xf32>
    %69 = arith.mulf %58, %35 : vector<2x128xf32>
    %70 = arith.mulf %50, %60 : vector<2x128xf32>
    %71 = arith.addf %69, %70 : vector<2x128xf32>
    %72 = math.tanh %71 : vector<2x128xf32>
    %73 = arith.mulf %68, %72 : vector<2x128xf32>
    %c0_29 = arith.constant 0 : index
    %c0_30 = arith.constant 0 : index
    %74 = vector.load %arg1[%c0_29, %c0_30] : memref<128x512xf32, #tpu.memory_space<vmem>>, vector<128x512xf32>
    %cst_31 = arith.constant dense<0.000000e+00> : vector<2x512xf32>
    %75 = tpu.matmul %73, %74, %cst_31 {dimension_numbers = #tpu.dot_dimension_numbers<[1], [0], [0], [1], [0, 0, 1, 1], [], []>} : vector<2x128xf32>, vector<128x512xf32>, vector<2x512xf32> -> vector<2x512xf32>
    %c2 = arith.constant 2 : index
    %c0_32 = arith.constant 0 : index
    %c0_33 = arith.constant 0 : index
    %76 = vector.load %arg0[%c2, %c0_32, %c0_33] : memref<8x2x512xf32, #tpu.memory_space<vmem>>, vector<1x2x512xf32>
    %77 = vector.shape_cast %76 : vector<1x2x512xf32> to vector<2x512xf32>
    %78 = arith.addf %75, %77 : vector<2x512xf32>
    %79 = vector.extract_strided_slice %78 {offsets = [0, 0], sizes = [2, 128], strides = [1, 1]} : vector<2x512xf32> to vector<2x128xf32>
    %cst_34 = arith.constant 5.000000e-01 : f32
    %80 = vector.broadcast %cst_34 : f32 to vector<2x128xf32>
    %81 = arith.mulf %80, %79 : vector<2x128xf32>
    %82 = math.tanh %81 : vector<2x128xf32>
    %cst_35 = arith.constant 5.000000e-01 : f32
    %83 = vector.broadcast %cst_35 : f32 to vector<2x128xf32>
    %84 = arith.mulf %83, %82 : vector<2x128xf32>
    %cst_36 = arith.constant 5.000000e-01 : f32
    %85 = vector.broadcast %cst_36 : f32 to vector<2x128xf32>
    %86 = arith.addf %84, %85 : vector<2x128xf32>
    %87 = vector.extract_strided_slice %78 {offsets = [0, 128], sizes = [2, 128], strides = [1, 1]} : vector<2x512xf32> to vector<2x128xf32>
    %cst_37 = arith.constant 5.000000e-01 : f32
    %88 = vector.broadcast %cst_37 : f32 to vector<2x128xf32>
    %89 = arith.mulf %88, %87 : vector<2x128xf32>
    %90 = math.tanh %89 : vector<2x128xf32>
    %cst_38 = arith.constant 5.000000e-01 : f32
    %91 = vector.broadcast %cst_38 : f32 to vector<2x128xf32>
    %92 = arith.mulf %91, %90 : vector<2x128xf32>
    %cst_39 = arith.constant 5.000000e-01 : f32
    %93 = vector.broadcast %cst_39 : f32 to vector<2x128xf32>
    %94 = arith.addf %92, %93 : vector<2x128xf32>
    %95 = vector.extract_strided_slice %78 {offsets = [0, 256], sizes = [2, 128], strides = [1, 1]} : vector<2x512xf32> to vector<2x128xf32>
    %96 = math.tanh %95 : vector<2x128xf32>
    %97 = vector.extract_strided_slice %78 {offsets = [0, 384], sizes = [2, 128], strides = [1, 1]} : vector<2x512xf32> to vector<2x128xf32>
    %cst_40 = arith.constant 5.000000e-01 : f32
    %98 = vector.broadcast %cst_40 : f32 to vector<2x128xf32>
    %99 = arith.mulf %98, %97 : vector<2x128xf32>
    %100 = math.tanh %99 : vector<2x128xf32>
    %cst_41 = arith.constant 5.000000e-01 : f32
    %101 = vector.broadcast %cst_41 : f32 to vector<2x128xf32>
    %102 = arith.mulf %101, %100 : vector<2x128xf32>
    %cst_42 = arith.constant 5.000000e-01 : f32
    %103 = vector.broadcast %cst_42 : f32 to vector<2x128xf32>
    %104 = arith.addf %102, %103 : vector<2x128xf32>
    %105 = arith.mulf %94, %71 : vector<2x128xf32>
    %106 = arith.mulf %86, %96 : vector<2x128xf32>
    %107 = arith.addf %105, %106 : vector<2x128xf32>
    %108 = math.tanh %107 : vector<2x128xf32>
    %109 = arith.mulf %104, %108 : vector<2x128xf32>
    %c0_43 = arith.constant 0 : index
    %c0_44 = arith.constant 0 : index
    %110 = vector.load %arg1[%c0_43, %c0_44] : memref<128x512xf32, #tpu.memory_space<vmem>>, vector<128x512xf32>
    %cst_45 = arith.constant dense<0.000000e+00> : vector<2x512xf32>
    %111 = tpu.matmul %109, %110, %cst_45 {dimension_numbers = #tpu.dot_dimension_numbers<[1], [0], [0], [1], [0, 0, 1, 1], [], []>} : vector<2x128xf32>, vector<128x512xf32>, vector<2x512xf32> -> vector<2x512xf32>
    %c3 = arith.constant 3 : index
    %c0_46 = arith.constant 0 : index
    %c0_47 = arith.constant 0 : index
    %112 = vector.load %arg0[%c3, %c0_46, %c0_47] : memref<8x2x512xf32, #tpu.memory_space<vmem>>, vector<1x2x512xf32>
    %113 = vector.shape_cast %112 : vector<1x2x512xf32> to vector<2x512xf32>
    %114 = arith.addf %111, %113 : vector<2x512xf32>
    %115 = vector.extract_strided_slice %114 {offsets = [0, 0], sizes = [2, 128], strides = [1, 1]} : vector<2x512xf32> to vector<2x128xf32>
    %cst_48 = arith.constant 5.000000e-01 : f32
    %116 = vector.broadcast %cst_48 : f32 to vector<2x128xf32>
    %117 = arith.mulf %116, %115 : vector<2x128xf32>
    %118 = math.tanh %117 : vector<2x128xf32>
    %cst_49 = arith.constant 5.000000e-01 : f32
    %119 = vector.broadcast %cst_49 : f32 to vector<2x128xf32>
    %120 = arith.mulf %119, %118 : vector<2x128xf32>
    %cst_50 = arith.constant 5.000000e-01 : f32
    %121 = vector.broadcast %cst_50 : f32 to vector<2x128xf32>
    %122 = arith.addf %120, %121 : vector<2x128xf32>
    %123 = vector.extract_strided_slice %114 {offsets = [0, 128], sizes = [2, 128], strides = [1, 1]} : vector<2x512xf32> to vector<2x128xf32>
    %cst_51 = arith.constant 5.000000e-01 : f32
    %124 = vector.broadcast %cst_51 : f32 to vector<2x128xf32>
    %125 = arith.mulf %124, %123 : vector<2x128xf32>
    %126 = math.tanh %125 : vector<2x128xf32>
    %cst_52 = arith.constant 5.000000e-01 : f32
    %127 = vector.broadcast %cst_52 : f32 to vector<2x128xf32>
    %128 = arith.mulf %127, %126 : vector<2x128xf32>
    %cst_53 = arith.constant 5.000000e-01 : f32
    %129 = vector.broadcast %cst_53 : f32 to vector<2x128xf32>
    %130 = arith.addf %128, %129 : vector<2x128xf32>
    %131 = vector.extract_strided_slice %114 {offsets = [0, 256], sizes = [2, 128], strides = [1, 1]} : vector<2x512xf32> to vector<2x128xf32>
    %132 = math.tanh %131 : vector<2x128xf32>
    %133 = vector.extract_strided_slice %114 {offsets = [0, 384], sizes = [2, 128], strides = [1, 1]} : vector<2x512xf32> to vector<2x128xf32>
    %cst_54 = arith.constant 5.000000e-01 : f32
    %134 = vector.broadcast %cst_54 : f32 to vector<2x128xf32>
    %135 = arith.mulf %134, %133 : vector<2x128xf32>
    %136 = math.tanh %135 : vector<2x128xf32>
    %cst_55 = arith.constant 5.000000e-01 : f32
    %137 = vector.broadcast %cst_55 : f32 to vector<2x128xf32>
    %138 = arith.mulf %137, %136 : vector<2x128xf32>
    %cst_56 = arith.constant 5.000000e-01 : f32
    %139 = vector.broadcast %cst_56 : f32 to vector<2x128xf32>
    %140 = arith.addf %138, %139 : vector<2x128xf32>
    %141 = arith.mulf %130, %107 : vector<2x128xf32>
    %142 = arith.mulf %122, %132 : vector<2x128xf32>
    %143 = arith.addf %141, %142 : vector<2x128xf32>
    %144 = math.tanh %143 : vector<2x128xf32>
    %145 = arith.mulf %140, %144 : vector<2x128xf32>
    %c0_57 = arith.constant 0 : index
    %c0_58 = arith.constant 0 : index
    %146 = vector.load %arg1[%c0_57, %c0_58] : memref<128x512xf32, #tpu.memory_space<vmem>>, vector<128x512xf32>
    %cst_59 = arith.constant dense<0.000000e+00> : vector<2x512xf32>
    %147 = tpu.matmul %145, %146, %cst_59 {dimension_numbers = #tpu.dot_dimension_numbers<[1], [0], [0], [1], [0, 0, 1, 1], [], []>} : vector<2x128xf32>, vector<128x512xf32>, vector<2x512xf32> -> vector<2x512xf32>
    %c4 = arith.constant 4 : index
    %c0_60 = arith.constant 0 : index
    %c0_61 = arith.constant 0 : index
    %148 = vector.load %arg0[%c4, %c0_60, %c0_61] : memref<8x2x512xf32, #tpu.memory_space<vmem>>, vector<1x2x512xf32>
    %149 = vector.shape_cast %148 : vector<1x2x512xf32> to vector<2x512xf32>
    %150 = arith.addf %147, %149 : vector<2x512xf32>
    %151 = vector.extract_strided_slice %150 {offsets = [0, 0], sizes = [2, 128], strides = [1, 1]} : vector<2x512xf32> to vector<2x128xf32>
    %cst_62 = arith.constant 5.000000e-01 : f32
    %152 = vector.broadcast %cst_62 : f32 to vector<2x128xf32>
    %153 = arith.mulf %152, %151 : vector<2x128xf32>
    %154 = math.tanh %153 : vector<2x128xf32>
    %cst_63 = arith.constant 5.000000e-01 : f32
    %155 = vector.broadcast %cst_63 : f32 to vector<2x128xf32>
    %156 = arith.mulf %155, %154 : vector<2x128xf32>
    %cst_64 = arith.constant 5.000000e-01 : f32
    %157 = vector.broadcast %cst_64 : f32 to vector<2x128xf32>
    %158 = arith.addf %156, %157 : vector<2x128xf32>
    %159 = vector.extract_strided_slice %150 {offsets = [0, 128], sizes = [2, 128], strides = [1, 1]} : vector<2x512xf32> to vector<2x128xf32>
    %cst_65 = arith.constant 5.000000e-01 : f32
    %160 = vector.broadcast %cst_65 : f32 to vector<2x128xf32>
    %161 = arith.mulf %160, %159 : vector<2x128xf32>
    %162 = math.tanh %161 : vector<2x128xf32>
    %cst_66 = arith.constant 5.000000e-01 : f32
    %163 = vector.broadcast %cst_66 : f32 to vector<2x128xf32>
    %164 = arith.mulf %163, %162 : vector<2x128xf32>
    %cst_67 = arith.constant 5.000000e-01 : f32
    %165 = vector.broadcast %cst_67 : f32 to vector<2x128xf32>
    %166 = arith.addf %164, %165 : vector<2x128xf32>
    %167 = vector.extract_strided_slice %150 {offsets = [0, 256], sizes = [2, 128], strides = [1, 1]} : vector<2x512xf32> to vector<2x128xf32>
    %168 = math.tanh %167 : vector<2x128xf32>
    %169 = vector.extract_strided_slice %150 {offsets = [0, 384], sizes = [2, 128], strides = [1, 1]} : vector<2x512xf32> to vector<2x128xf32>
    %cst_68 = arith.constant 5.000000e-01 : f32
    %170 = vector.broadcast %cst_68 : f32 to vector<2x128xf32>
    %171 = arith.mulf %170, %169 : vector<2x128xf32>
    %172 = math.tanh %171 : vector<2x128xf32>
    %cst_69 = arith.constant 5.000000e-01 : f32
    %173 = vector.broadcast %cst_69 : f32 to vector<2x128xf32>
    %174 = arith.mulf %173, %172 : vector<2x128xf32>
    %cst_70 = arith.constant 5.000000e-01 : f32
    %175 = vector.broadcast %cst_70 : f32 to vector<2x128xf32>
    %176 = arith.addf %174, %175 : vector<2x128xf32>
    %177 = arith.mulf %166, %143 : vector<2x128xf32>
    %178 = arith.mulf %158, %168 : vector<2x128xf32>
    %179 = arith.addf %177, %178 : vector<2x128xf32>
    %180 = math.tanh %179 : vector<2x128xf32>
    %181 = arith.mulf %176, %180 : vector<2x128xf32>
    %c0_71 = arith.constant 0 : index
    %c0_72 = arith.constant 0 : index
    %182 = vector.load %arg1[%c0_71, %c0_72] : memref<128x512xf32, #tpu.memory_space<vmem>>, vector<128x512xf32>
    %cst_73 = arith.constant dense<0.000000e+00> : vector<2x512xf32>
    %183 = tpu.matmul %181, %182, %cst_73 {dimension_numbers = #tpu.dot_dimension_numbers<[1], [0], [0], [1], [0, 0, 1, 1], [], []>} : vector<2x128xf32>, vector<128x512xf32>, vector<2x512xf32> -> vector<2x512xf32>
    %c5 = arith.constant 5 : index
    %c0_74 = arith.constant 0 : index
    %c0_75 = arith.constant 0 : index
    %184 = vector.load %arg0[%c5, %c0_74, %c0_75] : memref<8x2x512xf32, #tpu.memory_space<vmem>>, vector<1x2x512xf32>
    %185 = vector.shape_cast %184 : vector<1x2x512xf32> to vector<2x512xf32>
    %186 = arith.addf %183, %185 : vector<2x512xf32>
    %187 = vector.extract_strided_slice %186 {offsets = [0, 0], sizes = [2, 128], strides = [1, 1]} : vector<2x512xf32> to vector<2x128xf32>
    %cst_76 = arith.constant 5.000000e-01 : f32
    %188 = vector.broadcast %cst_76 : f32 to vector<2x128xf32>
    %189 = arith.mulf %188, %187 : vector<2x128xf32>
    %190 = math.tanh %189 : vector<2x128xf32>
    %cst_77 = arith.constant 5.000000e-01 : f32
    %191 = vector.broadcast %cst_77 : f32 to vector<2x128xf32>
    %192 = arith.mulf %191, %190 : vector<2x128xf32>
    %cst_78 = arith.constant 5.000000e-01 : f32
    %193 = vector.broadcast %cst_78 : f32 to vector<2x128xf32>
    %194 = arith.addf %192, %193 : vector<2x128xf32>
    %195 = vector.extract_strided_slice %186 {offsets = [0, 128], sizes = [2, 128], strides = [1, 1]} : vector<2x512xf32> to vector<2x128xf32>
    %cst_79 = arith.constant 5.000000e-01 : f32
    %196 = vector.broadcast %cst_79 : f32 to vector<2x128xf32>
    %197 = arith.mulf %196, %195 : vector<2x128xf32>
    %198 = math.tanh %197 : vector<2x128xf32>
    %cst_80 = arith.constant 5.000000e-01 : f32
    %199 = vector.broadcast %cst_80 : f32 to vector<2x128xf32>
    %200 = arith.mulf %199, %198 : vector<2x128xf32>
    %cst_81 = arith.constant 5.000000e-01 : f32
    %201 = vector.broadcast %cst_81 : f32 to vector<2x128xf32>
    %202 = arith.addf %200, %201 : vector<2x128xf32>
    %203 = vector.extract_strided_slice %186 {offsets = [0, 256], sizes = [2, 128], strides = [1, 1]} : vector<2x512xf32> to vector<2x128xf32>
    %204 = math.tanh %203 : vector<2x128xf32>
    %205 = vector.extract_strided_slice %186 {offsets = [0, 384], sizes = [2, 128], strides = [1, 1]} : vector<2x512xf32> to vector<2x128xf32>
    %cst_82 = arith.constant 5.000000e-01 : f32
    %206 = vector.broadcast %cst_82 : f32 to vector<2x128xf32>
    %207 = arith.mulf %206, %205 : vector<2x128xf32>
    %208 = math.tanh %207 : vector<2x128xf32>
    %cst_83 = arith.constant 5.000000e-01 : f32
    %209 = vector.broadcast %cst_83 : f32 to vector<2x128xf32>
    %210 = arith.mulf %209, %208 : vector<2x128xf32>
    %cst_84 = arith.constant 5.000000e-01 : f32
    %211 = vector.broadcast %cst_84 : f32 to vector<2x128xf32>
    %212 = arith.addf %210, %211 : vector<2x128xf32>
    %213 = arith.mulf %202, %179 : vector<2x128xf32>
    %214 = arith.mulf %194, %204 : vector<2x128xf32>
    %215 = arith.addf %213, %214 : vector<2x128xf32>
    %216 = math.tanh %215 : vector<2x128xf32>
    %217 = arith.mulf %212, %216 : vector<2x128xf32>
    %c0_85 = arith.constant 0 : index
    %c0_86 = arith.constant 0 : index
    %218 = vector.load %arg1[%c0_85, %c0_86] : memref<128x512xf32, #tpu.memory_space<vmem>>, vector<128x512xf32>
    %cst_87 = arith.constant dense<0.000000e+00> : vector<2x512xf32>
    %219 = tpu.matmul %217, %218, %cst_87 {dimension_numbers = #tpu.dot_dimension_numbers<[1], [0], [0], [1], [0, 0, 1, 1], [], []>} : vector<2x128xf32>, vector<128x512xf32>, vector<2x512xf32> -> vector<2x512xf32>
    %c6 = arith.constant 6 : index
    %c0_88 = arith.constant 0 : index
    %c0_89 = arith.constant 0 : index
    %220 = vector.load %arg0[%c6, %c0_88, %c0_89] : memref<8x2x512xf32, #tpu.memory_space<vmem>>, vector<1x2x512xf32>
    %221 = vector.shape_cast %220 : vector<1x2x512xf32> to vector<2x512xf32>
    %222 = arith.addf %219, %221 : vector<2x512xf32>
    %223 = vector.extract_strided_slice %222 {offsets = [0, 0], sizes = [2, 128], strides = [1, 1]} : vector<2x512xf32> to vector<2x128xf32>
    %cst_90 = arith.constant 5.000000e-01 : f32
    %224 = vector.broadcast %cst_90 : f32 to vector<2x128xf32>
    %225 = arith.mulf %224, %223 : vector<2x128xf32>
    %226 = math.tanh %225 : vector<2x128xf32>
    %cst_91 = arith.constant 5.000000e-01 : f32
    %227 = vector.broadcast %cst_91 : f32 to vector<2x128xf32>
    %228 = arith.mulf %227, %226 : vector<2x128xf32>
    %cst_92 = arith.constant 5.000000e-01 : f32
    %229 = vector.broadcast %cst_92 : f32 to vector<2x128xf32>
    %230 = arith.addf %228, %229 : vector<2x128xf32>
    %231 = vector.extract_strided_slice %222 {offsets = [0, 128], sizes = [2, 128], strides = [1, 1]} : vector<2x512xf32> to vector<2x128xf32>
    %cst_93 = arith.constant 5.000000e-01 : f32
    %232 = vector.broadcast %cst_93 : f32 to vector<2x128xf32>
    %233 = arith.mulf %232, %231 : vector<2x128xf32>
    %234 = math.tanh %233 : vector<2x128xf32>
    %cst_94 = arith.constant 5.000000e-01 : f32
    %235 = vector.broadcast %cst_94 : f32 to vector<2x128xf32>
    %236 = arith.mulf %235, %234 : vector<2x128xf32>
    %cst_95 = arith.constant 5.000000e-01 : f32
    %237 = vector.broadcast %cst_95 : f32 to vector<2x128xf32>
    %238 = arith.addf %236, %237 : vector<2x128xf32>
    %239 = vector.extract_strided_slice %222 {offsets = [0, 256], sizes = [2, 128], strides = [1, 1]} : vector<2x512xf32> to vector<2x128xf32>
    %240 = math.tanh %239 : vector<2x128xf32>
    %241 = vector.extract_strided_slice %222 {offsets = [0, 384], sizes = [2, 128], strides = [1, 1]} : vector<2x512xf32> to vector<2x128xf32>
    %cst_96 = arith.constant 5.000000e-01 : f32
    %242 = vector.broadcast %cst_96 : f32 to vector<2x128xf32>
    %243 = arith.mulf %242, %241 : vector<2x128xf32>
    %244 = math.tanh %243 : vector<2x128xf32>
    %cst_97 = arith.constant 5.000000e-01 : f32
    %245 = vector.broadcast %cst_97 : f32 to vector<2x128xf32>
    %246 = arith.mulf %245, %244 : vector<2x128xf32>
    %cst_98 = arith.constant 5.000000e-01 : f32
    %247 = vector.broadcast %cst_98 : f32 to vector<2x128xf32>
    %248 = arith.addf %246, %247 : vector<2x128xf32>
    %249 = arith.mulf %238, %215 : vector<2x128xf32>
    %250 = arith.mulf %230, %240 : vector<2x128xf32>
    %251 = arith.addf %249, %250 : vector<2x128xf32>
    %252 = math.tanh %251 : vector<2x128xf32>
    %253 = arith.mulf %248, %252 : vector<2x128xf32>
    %c0_99 = arith.constant 0 : index
    %c0_100 = arith.constant 0 : index
    %254 = vector.load %arg1[%c0_99, %c0_100] : memref<128x512xf32, #tpu.memory_space<vmem>>, vector<128x512xf32>
    %cst_101 = arith.constant dense<0.000000e+00> : vector<2x512xf32>
    %255 = tpu.matmul %253, %254, %cst_101 {dimension_numbers = #tpu.dot_dimension_numbers<[1], [0], [0], [1], [0, 0, 1, 1], [], []>} : vector<2x128xf32>, vector<128x512xf32>, vector<2x512xf32> -> vector<2x512xf32>
    %c7 = arith.constant 7 : index
    %c0_102 = arith.constant 0 : index
    %c0_103 = arith.constant 0 : index
    %256 = vector.load %arg0[%c7, %c0_102, %c0_103] : memref<8x2x512xf32, #tpu.memory_space<vmem>>, vector<1x2x512xf32>
    %257 = vector.shape_cast %256 : vector<1x2x512xf32> to vector<2x512xf32>
    %258 = arith.addf %255, %257 : vector<2x512xf32>
    %259 = vector.extract_strided_slice %258 {offsets = [0, 0], sizes = [2, 128], strides = [1, 1]} : vector<2x512xf32> to vector<2x128xf32>
    %cst_104 = arith.constant 5.000000e-01 : f32
    %260 = vector.broadcast %cst_104 : f32 to vector<2x128xf32>
    %261 = arith.mulf %260, %259 : vector<2x128xf32>
    %262 = math.tanh %261 : vector<2x128xf32>
    %cst_105 = arith.constant 5.000000e-01 : f32
    %263 = vector.broadcast %cst_105 : f32 to vector<2x128xf32>
    %264 = arith.mulf %263, %262 : vector<2x128xf32>
    %cst_106 = arith.constant 5.000000e-01 : f32
    %265 = vector.broadcast %cst_106 : f32 to vector<2x128xf32>
    %266 = arith.addf %264, %265 : vector<2x128xf32>
    %267 = vector.extract_strided_slice %258 {offsets = [0, 128], sizes = [2, 128], strides = [1, 1]} : vector<2x512xf32> to vector<2x128xf32>
    %cst_107 = arith.constant 5.000000e-01 : f32
    %268 = vector.broadcast %cst_107 : f32 to vector<2x128xf32>
    %269 = arith.mulf %268, %267 : vector<2x128xf32>
    %270 = math.tanh %269 : vector<2x128xf32>
    %cst_108 = arith.constant 5.000000e-01 : f32
    %271 = vector.broadcast %cst_108 : f32 to vector<2x128xf32>
    %272 = arith.mulf %271, %270 : vector<2x128xf32>
    %cst_109 = arith.constant 5.000000e-01 : f32
    %273 = vector.broadcast %cst_109 : f32 to vector<2x128xf32>
    %274 = arith.addf %272, %273 : vector<2x128xf32>
    %275 = vector.extract_strided_slice %258 {offsets = [0, 256], sizes = [2, 128], strides = [1, 1]} : vector<2x512xf32> to vector<2x128xf32>
    %276 = math.tanh %275 : vector<2x128xf32>
    %277 = vector.extract_strided_slice %258 {offsets = [0, 384], sizes = [2, 128], strides = [1, 1]} : vector<2x512xf32> to vector<2x128xf32>
    %cst_110 = arith.constant 5.000000e-01 : f32
    %278 = vector.broadcast %cst_110 : f32 to vector<2x128xf32>
    %279 = arith.mulf %278, %277 : vector<2x128xf32>
    %280 = math.tanh %279 : vector<2x128xf32>
    %cst_111 = arith.constant 5.000000e-01 : f32
    %281 = vector.broadcast %cst_111 : f32 to vector<2x128xf32>
    %282 = arith.mulf %281, %280 : vector<2x128xf32>
    %cst_112 = arith.constant 5.000000e-01 : f32
    %283 = vector.broadcast %cst_112 : f32 to vector<2x128xf32>
    %284 = arith.addf %282, %283 : vector<2x128xf32>
    %285 = arith.mulf %274, %251 : vector<2x128xf32>
    %286 = arith.mulf %266, %276 : vector<2x128xf32>
    %287 = arith.addf %285, %286 : vector<2x128xf32>
    %288 = math.tanh %287 : vector<2x128xf32>
    %289 = arith.mulf %284, %288 : vector<2x128xf32>
    %c0_113 = arith.constant 0 : index
    %c0_114 = arith.constant 0 : index
    %290 = vector.load %arg2[%c0_113, %c0_114] : memref<1x128xf32, #tpu.memory_space<vmem>>, vector<1x128xf32>
    %291 = vector.broadcast %290 : vector<1x128xf32> to vector<2x128xf32>
    %292 = arith.mulf %289, %291 : vector<2x128xf32>
    %cst_115 = arith.constant dense<0.000000e+00> : vector<2xf32>
    %293 = vector.multi_reduction <add>, %292, %cst_115 [1] : vector<2x128xf32> to vector<2xf32>
    %294 = vector.shape_cast %293 : vector<2xf32> to vector<2x1xf32>
    %c0_116 = arith.constant 0 : index
    %c0_117 = arith.constant 0 : index
    %295 = vector.load %arg3[%c0_116, %c0_117] : memref<1x1xf32, #tpu.memory_space<vmem>>, vector<1x1xf32>
    %296 = vector.broadcast %295 : vector<1x1xf32> to vector<2x1xf32>
    %297 = arith.addf %294, %296 : vector<2x1xf32>
    %c0_118 = arith.constant 0 : index
    %c0_119 = arith.constant 0 : index
    %298 = vector.load %arg4[%c0_118, %c0_119] : memref<2x1xf32, #tpu.memory_space<vmem>>, vector<2x1xf32>
    tpu.vector_store %arg4[%c0_118, %c0_119], %297 {strides = array<i32>} : memref<2x1xf32, #tpu.memory_space<vmem>>, vector<2x1xf32>,
    return
  }
}

</mosaic_0001>

<bundles_post_ra>
// kernel: lstm_forward.1
= control target key start
LH: loop header
LB: loop body
LE: loop exit
PB: predicated region body
PF: predicated region fallthrough
CT: control target
= control target key end

     0   :  { %v3020_v3 = vmov 0.0   ;;  %vm1562_vm0 = vcmask 1041408   ;;  %vm1574_vm1 = vcmask 1024   ;;  %s3015_s1 = inlined_call_operand.vmem [shape: f32[128,512], index: 1, kind: input, shape index: {}]   ;;  %s3016_s0 = inlined_call_operand.vmem [shape: f32[8,2,512], index: 0, kind: input, shape index: {}]   ;;  %s3017_s3 = inlined_call_operand.<no memory space> [shape: f32[1,1], index: 3, kind: input, shape index: {}]   ;;  %s3018_s2 = inlined_call_operand.vmem [shape: f32[1,128], index: 2, kind: input, shape index: {}]   ;;  %s3019_s4 = inlined_call_operand.vmem [shape: f32[2,1], index: 4, kind: output, shape index: {}]  }
   0x1   :  { %v1773_v0 = vld [vmem:[%s3015_s1 + $0x1e8] sm:$0xff]  ;;  %v1778_v1 = vld [vmem:[%s3015_s1 + $0x1e0] sm:$0xff]  ;;  %170 = vmatprep.mubr.f32.mxu0 %v3020_v3  ;;  %241 = vmatprep.mubr.f32.mxu1 %v3020_v3  ;;  %v1802_v6 = vld [vmem:[%s3015_s1 + $0x1f8] sm:$0xff] }
   0x2   :  { %3102 = vst [vmem:[#allocation3_spill] sm:$0xff] %v1773_v0  ;;  %v1783_v2 = vld [vmem:[%s3015_s1 + $0x1c8] sm:$0xff]  ;;  %106 = vmatprep.subr.mxu0 %v1773_v0  ;;  %v1791_v4 = vld [vmem:[%s3015_s1 + $0x1c0] sm:$0xff]  ;;  %3103 = vst [vmem:[#allocation4_spill] sm:$0xff] %v1802_v6  ;;  %177 = vmatprep.subr.mxu1 %v1802_v6 }
   0x3   :  { %107 = vmatpush1.msra.mxu0 %v1778_v1  ;;  %v1797_v5 = vld [vmem:[%s3015_s1 + $0x1a8] sm:$0xff]  ;;  %v1808_v7 = vld [vmem:[%s3015_s1 + $0x1a0] sm:$0xff]  ;;  %v1814_v8 = vld [vmem:[%s3015_s1 + $0x1f0] sm:$0xff] }
   0x4   :  { %108 = vmatprep.subr.mxu0 %v1783_v2  ;;  %v1819_v9 = vld [vmem:[%s3015_s1 + $0x1d8] sm:$0xff]  ;;  %v1825_v10 = vld [vmem:[%s3015_s1 + $0x188] sm:$0xff]  ;;  %178 = vmatpush1.msra.mxu1 %v1814_v8  ;;  %v1831_v11 = vld [vmem:[%s3015_s1 + $0x1d0] sm:$0xff] }
   0x5   :  { %109 = vmatpush1.msra.mxu0 %v1791_v4  ;;  %v1837_v12 = vld [vmem:[%s3015_s1 + $0x180] sm:$0xff]  ;;  %179 = vmatprep.subr.mxu1 %v1819_v9  ;;  %v1843_v13 = vld [vmem:[%s3015_s1 + $0x1b8] sm:$0xff]  ;;  %v1848_v14 = vld [vmem:[%s3015_s1 + $0x1b0] sm:$0xff] }
   0x6   :  { %110 = vmatprep.subr.mxu0 %v1797_v5  ;;  %v1854_v15 = vld [vmem:[%s3015_s1 + $0x168] sm:$0xff]  ;;  %180 = vmatpush1.msra.mxu1 %v1831_v11  ;;  %v1860_v16 = vld [vmem:[%s3015_s1 + $0x198] sm:$0xff]  ;;  %v1866_v17 = vld [vmem:[%s3015_s1 + $0x160] sm:$0xff] }
   0x7   :  { %111 = vmatpush1.msra.mxu0 %v1808_v7  ;;  %181 = vmatprep.subr.mxu1 %v1843_v13  ;;  %v1872_v18 = vld [vmem:[%s3015_s1 + $0x190] sm:$0xff]  ;;  %v1878_v19 = vld [vmem:[%s3015_s1 + $0x148] sm:$0xff]  ;;  %v1884_v20 = vld [vmem:[%s3015_s1 + $0x178] sm:$0xff] }
   0x8   :  { %112 = vmatprep.subr.mxu0 %v1825_v10  ;;  %182 = vmatpush1.msra.mxu1 %v1848_v14  ;;  %v1890_v21 = vld [vmem:[%s3015_s1 + $0x140] sm:$0xff]  ;;  %v1896_v22 = vld [vmem:[%s3015_s1 + $0x170] sm:$0xff]  ;;  %v1902_v23 = vld [vmem:[%s3015_s1 + $0x128] sm:$0xff] }
   0x9   :  { %113 = vmatpush1.msra.mxu0 %v1837_v12  ;;  %183 = vmatprep.subr.mxu1 %v1860_v16  ;;  %v1908_v24 = vld [vmem:[%s3015_s1 + $0x158] sm:$0xff]  ;;  %v1914_v25 = vld [vmem:[%s3015_s1 + $0x120] sm:$0xff]  ;;  %v1920_v26 = vld [vmem:[%s3015_s1 + $0x150] sm:$0xff] }
   0xa   :  { %114 = vmatprep.subr.mxu0 %v1854_v15  ;;  %184 = vmatpush1.msra.mxu1 %v1872_v18  ;;  %v1926_v27 = vld [vmem:[%s3015_s1 + $0x108] sm:$0xff]  ;;  %v1932_v28 = vld [vmem:[%s3015_s1 + $0x138] sm:$0xff]  ;;  %v1938_v29 = vld [vmem:[%s3015_s1 + $0x100] sm:$0xff] }
   0xb   :  { %115 = vmatpush1.msra.mxu0 %v1866_v17  ;;  %185 = vmatprep.subr.mxu1 %v1884_v20  ;;  %v1944_v30 = vld [vmem:[%s3015_s1 + $0x130] sm:$0xff]  ;;  %v1950_v31 = vld [vmem:[%s3015_s1 + $0xe8] sm:$0xff]  ;;  %v1956_v32 = vld [vmem:[%s3015_s1 + $0x118] sm:$0xff] }
   0xc   :  { %116 = vmatprep.subr.mxu0 %v1878_v19  ;;  %186 = vmatpush1.msra.mxu1 %v1896_v22  ;;  %v1962_v33 = vld [vmem:[%s3015_s1 + $0xe0] sm:$0xff]  ;;  %v1968_v34 = vld [vmem:[%s3015_s1 + $0x110] sm:$0xff]  ;;  %v1974_v35 = vld [vmem:[%s3015_s1 + $0xc8] sm:$0xff] }
   0xd   :  { %117 = vmatpush1.msra.mxu0 %v1890_v21  ;;  %187 = vmatprep.subr.mxu1 %v1908_v24  ;;  %v1980_v36 = vld [vmem:[%s3015_s1 + $0xf8] sm:$0xff]  ;;  %v1986_v37 = vld [vmem:[%s3015_s1 + $0xc0] sm:$0xff]  ;;  %v1992_v38 = vld [vmem:[%s3015_s1 + $0xf0] sm:$0xff] }
   0xe   :  { %118 = vmatprep.subr.mxu0 %v1902_v23  ;;  %188 = vmatpush1.msra.mxu1 %v1920_v26  ;;  %v1998_v39 = vld [vmem:[%s3015_s1 + $0xa8] sm:$0xff]  ;;  %v2004_v40 = vld [vmem:[%s3015_s1 + $0xd8] sm:$0xff]  ;;  %v2010_v41 = vld [vmem:[%s3015_s1 + $0xa0] sm:$0xff] }
   0xf   :  { %119 = vmatpush1.msra.mxu0 %v1914_v25  ;;  %189 = vmatprep.subr.mxu1 %v1932_v28  ;;  %v2016_v42 = vld [vmem:[%s3015_s1 + $0xd0] sm:$0xff]  ;;  %v2022_v43 = vld [vmem:[%s3015_s1 + $0x88] sm:$0xff]  ;;  %v2028_v44 = vld [vmem:[%s3015_s1 + $0xb8] sm:$0xff] }
  0x10   :  { %120 = vmatprep.subr.mxu0 %v1926_v27  ;;  %190 = vmatpush1.msra.mxu1 %v1944_v30  ;;  %3104 = vst [vmem:[#allocation5_spill] sm:$0xff] %v2022_v43  ;;  %v2034_v45 = vld [vmem:[%s3015_s1 + $0x80] sm:$0xff]  ;;  %v2040_v46 = vld [vmem:[%s3015_s1 + $0xb0] sm:$0xff]  ;;  %v2046_v47 = vld [vmem:[%s3015_s1 + $0x68] sm:$0xff] }
  0x11   :  { %121 = vmatpush1.msra.mxu0 %v1938_v29  ;;  %191 = vmatprep.subr.mxu1 %v1956_v32  ;;  %3105 = vst [vmem:[#allocation6_spill] sm:$0xff] %v2034_v45  ;;  %3106 = vst [vmem:[#allocation7_spill] sm:$0xff] %v2046_v47  ;;  %v2052_v48 = vld [vmem:[%s3015_s1 + $0x98] sm:$0xff]  ;;  %v2058_v49 = vld [vmem:[%s3015_s1 + $0x60] sm:$0xff] }
  0x12   :  { %122 = vmatprep.subr.mxu0 %v1950_v31  ;;  %192 = vmatpush1.msra.mxu1 %v1968_v34  ;;  %3107 = vst [vmem:[#allocation8_spill] sm:$0xff] %v2052_v48  ;;  %3108 = vst [vmem:[#allocation9_spill] sm:$0xff] %v2058_v49  ;;  %v2064_v50 = vld [vmem:[%s3015_s1 + $0x90] sm:$0xff]  ;;  %v2070_v51 = vld [vmem:[%s3015_s1 + $0x48] sm:$0xff] }
  0x13   :  { %123 = vmatpush1.msra.mxu0 %v1962_v33  ;;  %193 = vmatprep.subr.mxu1 %v1980_v36  ;;  %3109 = vst [vmem:[#allocation10_spill] sm:$0xff] %v2064_v50  ;;  %3110 = vst [vmem:[#allocation11_spill] sm:$0xff] %v2070_v51  ;;  %v2076_v52 = vld [vmem:[%s3015_s1 + $0x78] sm:$0xff]  ;;  %v2082_v53 = vld [vmem:[%s3015_s1 + $0x40] sm:$0xff] }
  0x14   :  { %124 = vmatprep.subr.mxu0 %v1974_v35  ;;  %194 = vmatpush1.msra.mxu1 %v1992_v38  ;;  %3111 = vst [vmem:[#allocation12_spill] sm:$0xff] %v2076_v52  ;;  %3112 = vst [vmem:[#allocation13_spill] sm:$0xff] %v2082_v53  ;;  %v2088_v54 = vld [vmem:[%s3015_s1 + $0x70] sm:$0xff]  ;;  %v2094_v55 = vld [vmem:[%s3015_s1 + $0x28] sm:$0xff] }
  0x15   :  { %125 = vmatpush1.msra.mxu0 %v1986_v37  ;;  %195 = vmatprep.subr.mxu1 %v2004_v40  ;;  %3113 = vst [vmem:[#allocation14_spill] sm:$0xff] %v2088_v54  ;;  %3114 = vst [vmem:[#allocation15_spill] sm:$0xff] %v2094_v55  ;;  %v2100_v56 = vld [vmem:[%s3015_s1 + $0x58] sm:$0xff]  ;;  %v2106_v57 = vld [vmem:[%s3015_s1 + $0x20] sm:$0xff] }
  0x16   :  { %126 = vmatprep.subr.mxu0 %v1998_v39  ;;  %196 = vmatpush1.msra.mxu1 %v2016_v42  ;;  %3115 = vst [vmem:[#allocation16_spill] sm:$0xff] %v2100_v56  ;;  %3116 = vst [vmem:[#allocation17_spill] sm:$0xff] %v2106_v57  ;;  %v2112_v58 = vld [vmem:[%s3015_s1 + $0x50] sm:$0xff]  ;;  %v2118_v59 = vld [vmem:[%s3015_s1 + $0x8] sm:$0xff] }
  0x17   :  { %127 = vmatpush1.msra.mxu0 %v2010_v41  ;;  %197 = vmatprep.subr.mxu1 %v2028_v44  ;;  %3117 = vst [vmem:[#allocation18_spill] sm:$0xff] %v2112_v58  ;;  %3118 = vst [vmem:[#allocation19_spill] sm:$0xff] %v2118_v59  ;;  %v2124_v60 = vld [vmem:[%s3015_s1 + $0x38] sm:$0xff]  ;;  %v2130_v61 = vld [vmem:[%s3015_s1] sm:$0xff] }
  0x18   :  { %128 = vmatprep.subr.mxu0 %v2022_v43  ;;  %198 = vmatpush1.msra.mxu1 %v2040_v46  ;;  %3119 = vst [vmem:[#allocation20_spill] sm:$0xff] %v2124_v60  ;;  %3120 = vst [vmem:[#allocation21_spill] sm:$0xff] %v2130_v61  ;;  %v2136_v62 = vld [vmem:[%s3015_s1 + $0x30] sm:$0xff]  ;;  %v2143_v63 = vld [vmem:[%s3015_s1 + $0x18] sm:$0xff] }
  0x19   :  { %129 = vmatpush1.msra.mxu0 %v2034_v45  ;;  %199 = vmatprep.subr.mxu1 %v2052_v48  ;;  %3121 = vst [vmem:[#allocation22_spill] sm:$0xff] %v2136_v62  ;;  %3122 = vst [vmem:[#allocation23_spill] sm:$0xff] %v2143_v63  ;;  %v2150_v3 = vld [vmem:[%s3015_s1 + $0x10] sm:$0xff] }
  0x1a   :  { %130 = vmatprep.subr.mxu0 %v2046_v47  ;;  %200 = vmatpush1.msra.mxu1 %v2064_v50  ;;  %3123 = vst [vmem:[#allocation24_spill] sm:$0xff] %v2150_v3 }
  0x1b   :  { %131 = vmatpush1.msra.mxu0 %v2058_v49  ;;  %201 = vmatprep.subr.mxu1 %v2076_v52 }
  0x1c   :  { %132 = vmatprep.subr.mxu0 %v2070_v51  ;;  %202 = vmatpush1.msra.mxu1 %v2088_v54 }
  0x1d   :  { %133 = vmatpush1.msra.mxu0 %v2082_v53  ;;  %203 = vmatprep.subr.mxu1 %v2100_v56 }
  0x1e   :  { %134 = vmatprep.subr.mxu0 %v2094_v55  ;;  %204 = vmatpush1.msra.mxu1 %v2112_v58 }
  0x1f   :  { %135 = vmatpush1.msra.mxu0 %v2106_v57  ;;  %205 = vmatprep.subr.mxu1 %v2124_v60  ;;  %v3124_v57 = vmov 0.0  }
  0x20   :  { %136 = vmatprep.subr.mxu0 %v2118_v59  ;;  %206 = vmatpush1.msra.mxu1 %v2136_v62 }
  0x21   :  { %137 = vmatpush1.msra.mxu0 %v2130_v61  ;;  %207 = vmatprep.subr.mxu1 %v2143_v63 }
  0x22   :  { %171 = vmatmul.mubr.f32.vlgmr.msra.gmra.mxu0 %v3124_v57  ;;  %208 = vmatpush1.msra.mxu1 %v2150_v3 }
  0x23   :  { %290 = vmatprep.subr.mxu0 %v1773_v0  ;;  %242 = vmatmul.mubr.f32.vlgmr.msra.gmra.mxu1 %v3124_v57 }
  0x24   :  { %361 = vmatprep.subr.mxu1 %v1802_v6  ;;  %291 = vmatpush1.msra.mxu0 %v1778_v1 }
  0x25   :  { %362 = vmatpush1.msra.mxu1 %v1814_v8  ;;  %292 = vmatprep.subr.mxu0 %v1783_v2 }
  0x26   :  { %363 = vmatprep.subr.mxu1 %v1819_v9  ;;  %293 = vmatpush1.msra.mxu0 %v1791_v4 }
  0x27   :  { %364 = vmatpush1.msra.mxu1 %v1831_v11  ;;  %294 = vmatprep.subr.mxu0 %v1797_v5 }
  0x28   :  { %365 = vmatprep.subr.mxu1 %v1843_v13  ;;  %295 = vmatpush1.msra.mxu0 %v1808_v7 }
  0x29   :  { %366 = vmatpush1.msra.mxu1 %v1848_v14  ;;  %296 = vmatprep.subr.mxu0 %v1825_v10 }
  0x2a   :  { %367 = vmatprep.subr.mxu1 %v1860_v16  ;;  %297 = vmatpush1.msra.mxu0 %v1837_v12 }
  0x2b   :  { %368 = vmatpush1.msra.mxu1 %v1872_v18  ;;  %298 = vmatprep.subr.mxu0 %v1854_v15 }
  0x2c   :  { %369 = vmatprep.subr.mxu1 %v1884_v20  ;;  %299 = vmatpush1.msra.mxu0 %v1866_v17 }
  0x2d   :  { %370 = vmatpush1.msra.mxu1 %v1896_v22  ;;  %300 = vmatprep.subr.mxu0 %v1878_v19 }
  0x2e   :  { %371 = vmatprep.subr.mxu1 %v1908_v24  ;;  %301 = vmatpush1.msra.mxu0 %v1890_v21 }
  0x2f   :  { %372 = vmatpush1.msra.mxu1 %v1920_v26  ;;  %302 = vmatprep.subr.mxu0 %v1902_v23 }
  0x30   :  { %373 = vmatprep.subr.mxu1 %v1932_v28  ;;  %303 = vmatpush1.msra.mxu0 %v1914_v25 }
  0x31   :  { %374 = vmatpush1.msra.mxu1 %v1944_v30  ;;  %304 = vmatprep.subr.mxu0 %v1926_v27 }
  0x32   :  { %375 = vmatprep.subr.mxu1 %v1956_v32  ;;  %305 = vmatpush1.msra.mxu0 %v1938_v29 }
  0x33   :  { %376 = vmatpush1.msra.mxu1 %v1968_v34  ;;  %306 = vmatprep.subr.mxu0 %v1950_v31 }
  0x34   :  { %377 = vmatprep.subr.mxu1 %v1980_v36  ;;  %307 = vmatpush1.msra.mxu0 %v1962_v33 }
  0x35   :  { %378 = vmatpush1.msra.mxu1 %v1992_v38  ;;  %308 = vmatprep.subr.mxu0 %v1974_v35 }
  0x36   :  { %379 = vmatprep.subr.mxu1 %v2004_v40  ;;  %309 = vmatpush1.msra.mxu0 %v1986_v37 }
  0x37   :  { %380 = vmatpush1.msra.mxu1 %v2016_v42  ;;  %310 = vmatprep.subr.mxu0 %v1998_v39 }
  0x38   :  { %381 = vmatprep.subr.mxu1 %v2028_v44  ;;  %311 = vmatpush1.msra.mxu0 %v2010_v41 }
  0x39   :  { %382 = vmatpush1.msra.mxu1 %v2040_v46  ;;  %312 = vmatprep.subr.mxu0 %v2022_v43 }
  0x3a   :  { %383 = vmatprep.subr.mxu1 %v2052_v48  ;;  %313 = vmatpush1.msra.mxu0 %v2034_v45 }
  0x3b   :  { %384 = vmatpush1.msra.mxu1 %v2064_v50  ;;  %314 = vmatprep.subr.mxu0 %v2046_v47  ;;  %v3125_v50 = vld [vmem:[#allocation17_spill] sm:$0xff] }
  0x3c   :  { %385 = vmatprep.subr.mxu1 %v2076_v52  ;;  %315 = vmatpush1.msra.mxu0 %v2058_v49 }
  0x3d   :  { %386 = vmatpush1.msra.mxu1 %v2088_v54  ;;  %316 = vmatprep.subr.mxu0 %v2070_v51 }
  0x3e   :  { %387 = vmatprep.subr.mxu1 %v2100_v56  ;;  %317 = vmatpush1.msra.mxu0 %v2082_v53 }
  0x3f   :  { %388 = vmatpush1.msra.mxu1 %v2112_v58  ;;  %318 = vmatprep.subr.mxu0 %v2094_v55  ;;  %v89_v55 = vlaneseq }
  0x40   :  { %389 = vmatprep.subr.mxu1 %v2124_v60  ;;  %319 = vmatpush1.msra.mxu0 %v3125_v50  ;;  %v1744_v60 = vmov 1983009808  }
  0x41   :  { %390 = vmatpush1.msra.mxu1 %v2136_v62  ;;  %320 = vmatprep.subr.mxu0 %v2118_v59  ;;  %v87_v50 = vunpack.c.l.s4 %v1744_v60  ;;  %v90_v58 = vshrl.u32 %v89_v55, 7 }
  0x42   :  { %391 = vmatprep.subr.mxu1 %v2143_v63  ;;  %321 = vmatpush1.msra.mxu0 %v2130_v61  ;;  %v83_v61 = vld [vmem:[%s3016_s0] sm:$0xff] }
  0x43   :  { %354 = vmatprep.mubr.f32.mxu0 %v3124_v57  ;;  %392 = vmatpush1.msra.mxu1 %v2150_v3  ;;  %v88_v62 = vunpack.c.0.s8 %v87_v50  ;;  %v85_v3 = vcombine.high %v83_v61, %v83_v61 }
  0x44   :  { %425 = vmatprep.mubr.f32.mxu1 %v3124_v57  ;;  %474 = vmatprep.subr.mxu0 %v1773_v0 }
  0x45   :  { %545 = vmatprep.subr.mxu1 %v1802_v6  ;;  %v2226_v59 = vsub.s32 %v88_v62, %v90_v58 }
  0x47   :  { %3126 = vst [vmem:[#allocation25_spill] sm:$0xff] %v2226_v59  ;;  %v92_v63 = vrot.slane %v83_v61, %v2226_v59  ;;  %v99_v0 = vrot.slane %v85_v3, %v2226_v59 }
  0x49   :  { %v100_v53 = vcombine.high %v92_v63, %v92_v63  ;;  %v101_v58 = vcombine.high %v99_v0, %v99_v0 }
  0xe2   :  { %v172_v57 = vpop.f32.mrf.mxu0 }
  0xe3   :  { %v173_v56 = vadd.f32 %v172_v57, %v92_v63  ;;  %v243_v51 = vpop.f32.mrf.mxu1 }
  0xe4   :  { %v174_v6 = vpop.f32.mrf.mxu0  ;;  %v244_v55 = vadd.f32 %v243_v51, %v99_v0 }
  0xe5   :  { %v248_v60 = vmul.f32 0.5, %v173_v56  ;;  %v175_v54 = vadd.f32 %v174_v6, %v100_v53  ;;  %v245_v62 = vpop.f32.mrf.mxu1 }
  0xe6   :  { %v246_v49 = vadd.f32 %v245_v62, %v101_v58  ;;  %v3135_v58 = vld [vmem:[#allocation16_spill] sm:$0xff]  ;;  %v3136_v62 = vld [vmem:[#allocation13_spill] sm:$0xff] }
  0xe7   :  { %1599 = vtanh.f32 %v248_v60  ;;  %v252_v50 = vmul.f32 0.5, %v175_v54 }
  0xe8   :  { %v257_v52 = vmul.f32 0.5, %v246_v49  ;;  %v3130_v49 = vld [vmem:[#allocation7_spill] sm:$0xff] }
  0xe9   :  { %1601 = vtanh.f32 %v252_v50  ;;  %v3133_v50 = vld [vmem:[#allocation14_spill] sm:$0xff] }
  0xea   :  { %1603 = vtanh.f32 %v244_v55  ;;  %v3134_v55 = vld [vmem:[#allocation11_spill] sm:$0xff] }
  0xeb   :  { %1605 = vtanh.f32 %v257_v52  ;;  %v3131_v52 = vld [vmem:[#allocation12_spill] sm:$0xff] }
  0xf4   :  { %v1600_v47 = vpop.eup %1599 }
  0xf5   :  { %v250_v61 = vmul.f32 0.5, %v1600_v47  ;;  %v3128_v47 = vld [vmem:[#allocation6_spill] sm:$0xff] }
  0xf6   :  { %v1602_v45 = vpop.eup %1601 }
  0xf7   :  { %v251_v48 = vadd.f32 0.5, %v250_v61  ;;  %v254_v57 = vmul.f32 0.5, %v1602_v45  ;;  %v1604_v3 = vpop.eup %1603  ;;  %v3127_v45 = vld [vmem:[#allocation8_spill] sm:$0xff]  ;;  %v3137_v61 = vld [vmem:[#allocation18_spill] sm:$0xff] }
  0xf8   :  { %v1606_v51 = vpop.eup %1605 }
  0xf9   :  { %v255_v63 = vadd.f32 0.5, %v254_v57  ;;  %v262_v56 = vmul.f32 %v1604_v3, %v251_v48  ;;  %v259_v53 = vmul.f32 0.5, %v1606_v51  ;;  %v3129_v48 = vld [vmem:[#allocation10_spill] sm:$0xff]  ;;  %v3138_v57 = vld [vmem:[#allocation15_spill] sm:$0xff]  ;;  %v3139_v3 = vld [vmem:[#allocation20_spill] sm:$0xff] }
  0xfa   :  { %v3142_v51 = vld [vmem:[#allocation19_spill] sm:$0xff] }
  0xfb   :  { %v261_v59 = vmul.f32 0.0, %v255_v63  ;;  %v260_v0 = vadd.f32 0.5, %v259_v53  ;;  %v3140_v63 = vld [vmem:[#allocation17_spill] sm:$0xff]  ;;  %v3143_v53 = vld [vmem:[#allocation23_spill] sm:$0xff] }
  0xfd   :  { %v2233_v6 = vadd.f32 %v262_v56, %v261_v59  ;;  %v3132_v59 = vld [vmem:[#allocation9_spill] sm:$0xff]  ;;  %v3141_v56 = vld [vmem:[#allocation22_spill] sm:$0xff] }
  0xff   :  { %1607 = vtanh.f32 %v2233_v6 }
 0x10c   :  { %v1608_v54 = vpop.eup %1607 }
 0x10d   :  { %v265_v60 = vmul.f32 %v1608_v54, %v260_v0  ;;  %v3144_v0 = vld [vmem:[#allocation21_spill] sm:$0xff]  ;;  %v3145_v54 = vmov 0.0  }
 0x10f   :  { %355 = vmatmul.mubr.f32.vlgmr.msra.gmra.mxu0 %v265_v60  ;;  %426 = vmatmul.mubr.f32.vlgmr.msra.gmra.mxu1 %v265_v60  ;;  %v3146_v60 = vld [vmem:[#allocation24_spill] sm:$0xff] }
 0x110   :  { %475 = vmatpush1.msra.mxu0 %v1778_v1  ;;  %546 = vmatpush1.msra.mxu1 %v1814_v8 }
 0x111   :  { %476 = vmatprep.subr.mxu0 %v1783_v2  ;;  %547 = vmatprep.subr.mxu1 %v1819_v9 }
 0x112   :  { %477 = vmatpush1.msra.mxu0 %v1791_v4  ;;  %548 = vmatpush1.msra.mxu1 %v1831_v11 }
 0x113   :  { %478 = vmatprep.subr.mxu0 %v1797_v5  ;;  %549 = vmatprep.subr.mxu1 %v1843_v13 }
 0x114   :  { %479 = vmatpush1.msra.mxu0 %v1808_v7  ;;  %550 = vmatpush1.msra.mxu1 %v1848_v14 }
 0x115   :  { %480 = vmatprep.subr.mxu0 %v1825_v10  ;;  %551 = vmatprep.subr.mxu1 %v1860_v16 }
 0x116   :  { %481 = vmatpush1.msra.mxu0 %v1837_v12  ;;  %552 = vmatpush1.msra.mxu1 %v1872_v18 }
 0x117   :  { %482 = vmatprep.subr.mxu0 %v1854_v15  ;;  %553 = vmatprep.subr.mxu1 %v1884_v20 }
 0x118   :  { %483 = vmatpush1.msra.mxu0 %v1866_v17  ;;  %554 = vmatpush1.msra.mxu1 %v1896_v22 }
 0x119   :  { %484 = vmatprep.subr.mxu0 %v1878_v19  ;;  %555 = vmatprep.subr.mxu1 %v1908_v24 }
 0x11a   :  { %485 = vmatpush1.msra.mxu0 %v1890_v21  ;;  %556 = vmatpush1.msra.mxu1 %v1920_v26 }
 0x11b   :  { %486 = vmatprep.subr.mxu0 %v1902_v23  ;;  %557 = vmatprep.subr.mxu1 %v1932_v28 }
 0x11c   :  { %487 = vmatpush1.msra.mxu0 %v1914_v25  ;;  %558 = vmatpush1.msra.mxu1 %v1944_v30 }
 0x11d   :  { %488 = vmatprep.subr.mxu0 %v1926_v27  ;;  %559 = vmatprep.subr.mxu1 %v1956_v32 }
 0x11e   :  { %489 = vmatpush1.msra.mxu0 %v1938_v29  ;;  %560 = vmatpush1.msra.mxu1 %v1968_v34 }
 0x11f   :  { %490 = vmatprep.subr.mxu0 %v1950_v31  ;;  %561 = vmatprep.subr.mxu1 %v1980_v36 }
 0x120   :  { %491 = vmatpush1.msra.mxu0 %v1962_v33  ;;  %562 = vmatpush1.msra.mxu1 %v1992_v38 }
 0x121   :  { %492 = vmatprep.subr.mxu0 %v1974_v35  ;;  %563 = vmatprep.subr.mxu1 %v2004_v40 }
 0x122   :  { %493 = vmatpush1.msra.mxu0 %v1986_v37  ;;  %564 = vmatpush1.msra.mxu1 %v2016_v42 }
 0x123   :  { %494 = vmatprep.subr.mxu0 %v1998_v39  ;;  %565 = vmatprep.subr.mxu1 %v2028_v44 }
 0x124   :  { %495 = vmatpush1.msra.mxu0 %v2010_v41  ;;  %566 = vmatpush1.msra.mxu1 %v2040_v46 }
 0x125   :  { %496 = vmatprep.subr.mxu0 %v2022_v43  ;;  %567 = vmatprep.subr.mxu1 %v3127_v45 }
 0x126   :  { %497 = vmatpush1.msra.mxu0 %v3128_v47  ;;  %568 = vmatpush1.msra.mxu1 %v3129_v48 }
 0x127   :  { %498 = vmatprep.subr.mxu0 %v3130_v49  ;;  %569 = vmatprep.subr.mxu1 %v3131_v52 }
 0x128   :  { %499 = vmatpush1.msra.mxu0 %v3132_v59  ;;  %570 = vmatpush1.msra.mxu1 %v3133_v50 }
 0x129   :  { %500 = vmatprep.subr.mxu0 %v3134_v55  ;;  %571 = vmatprep.subr.mxu1 %v3135_v58 }
 0x12a   :  { %501 = vmatpush1.msra.mxu0 %v3136_v62  ;;  %572 = vmatpush1.msra.mxu1 %v3137_v61  ;;  %v3147_v61 = vld [vmem:[#allocation3_spill] sm:$0xff] }
 0x12b   :  { %502 = vmatprep.subr.mxu0 %v3138_v57  ;;  %573 = vmatprep.subr.mxu1 %v3139_v3  ;;  %v3148_v57 = vld [vmem:[#allocation4_spill] sm:$0xff] }
 0x12c   :  { %503 = vmatpush1.msra.mxu0 %v3140_v63  ;;  %574 = vmatpush1.msra.mxu1 %v3141_v56  ;;  %v1580_v56 = vld [vmem:[%s3016_s0 + $0x8] sm:$0xff]  ;;  %v3149_v63 = vld [vmem:[#allocation25_spill] sm:$0xff] }
 0x12d   :  { %504 = vmatprep.subr.mxu0 %v3142_v51  ;;  %575 = vmatprep.subr.mxu1 %v3143_v53  ;;  %v276_v51 = vrot.slane %v1580_v56, %v3149_v63  ;;  %v269_v3 = vcombine.high %v1580_v56, %v1580_v56 }
 0x12e   :  { %505 = vmatpush1.msra.mxu0 %v3144_v0  ;;  %538 = vmatprep.mubr.f32.mxu0 %v3145_v54 }
 0x12f   :  { %576 = vmatpush1.msra.mxu1 %v3146_v60  ;;  %609 = vmatprep.mubr.f32.mxu1 %v3145_v54  ;;  %v284_v53 = vcombine.high %v276_v51, %v276_v51  ;;  %v283_v60 = vrot.slane %v269_v3, %v3149_v63 }
 0x130   :  { %658 = vmatprep.subr.mxu0 %v3147_v61  ;;  %729 = vmatprep.subr.mxu1 %v3148_v57 }
 0x131   :  { %v285_v57 = vcombine.high %v283_v60, %v283_v60 }
 0x1cf   :  { %v356_v62 = vpop.f32.mrf.mxu0  ;;  %v427_v54 = vpop.f32.mrf.mxu1 }
 0x1d0   :  { %v357_v0 = vadd.f32 %v356_v62, %v276_v51  ;;  %v428_v59 = vadd.f32 %v427_v54, %v283_v60  ;;  %v3157_v54 = vld [vmem:[#allocation14_spill] sm:$0xff]  ;;  %v3158_v60 = vld [vmem:[#allocation11_spill] sm:$0xff] }
 0x1d1   :  { %v358_v58 = vpop.f32.mrf.mxu0  ;;  %v429_v52 = vpop.f32.mrf.mxu1 }
 0x1d2   :  { %v432_v55 = vmul.f32 0.5, %v357_v0  ;;  %v359_v50 = vadd.f32 %v358_v58, %v284_v53  ;;  %v430_v49 = vadd.f32 %v429_v52, %v285_v57  ;;  %v3155_v57 = vld [vmem:[#allocation12_spill] sm:$0xff]  ;;  %v3156_v53 = vld [vmem:[#allocation9_spill] sm:$0xff] }
 0x1d4   :  { %1609 = vtanh.f32 %v432_v55  ;;  %v436_v61 = vmul.f32 0.5, %v359_v50  ;;  %v441_v48 = vmul.f32 0.5, %v430_v49 }
 0x1d6   :  { %1611 = vtanh.f32 %v436_v61 }
 0x1d7   :  { %1613 = vtanh.f32 %v428_v59 }
 0x1d8   :  { %1615 = vtanh.f32 %v441_v48  ;;  %v3154_v48 = vld [vmem:[#allocation7_spill] sm:$0xff] }
 0x1e1   :  { %v1610_v47 = vpop.eup %1609 }
 0x1e2   :  { %v434_v56 = vmul.f32 0.5, %v1610_v47  ;;  %v3153_v47 = vld [vmem:[#allocation10_spill] sm:$0xff] }
 0x1e3   :  { %v1612_v45 = vpop.eup %1611 }
 0x1e4   :  { %v435_v43 = vadd.f32 0.5, %v434_v56  ;;  %v438_v62 = vmul.f32 0.5, %v1612_v45  ;;  %v1614_v0 = vpop.eup %1613  ;;  %v3152_v45 = vld [vmem:[#allocation6_spill] sm:$0xff]  ;;  %v3159_v56 = vld [vmem:[#allocation16_spill] sm:$0xff] }
 0x1e5   :  { %v1616_v50 = vpop.eup %1615 }
 0x1e6   :  { %v439_v51 = vadd.f32 0.5, %v438_v62  ;;  %v446_v3 = vmul.f32 %v1614_v0, %v435_v43  ;;  %v443_v61 = vmul.f32 0.5, %v1616_v50  ;;  %v3150_v43 = vld [vmem:[#allocation5_spill] sm:$0xff]  ;;  %v3162_v0 = vld [vmem:[#allocation15_spill] sm:$0xff]  ;;  %v3165_v50 = vld [vmem:[#allocation22_spill] sm:$0xff] }
 0x1e7   :  { %v3160_v62 = vld [vmem:[#allocation13_spill] sm:$0xff] }
 0x1e8   :  { %v445_v58 = vmul.f32 %v439_v51, %v2233_v6  ;;  %v444_v59 = vadd.f32 0.5, %v443_v61  ;;  %v3151_v6 = vld [vmem:[#allocation8_spill] sm:$0xff]  ;;  %v3161_v51 = vld [vmem:[#allocation18_spill] sm:$0xff]  ;;  %v3166_v61 = vld [vmem:[#allocation19_spill] sm:$0xff] }
 0x1ea   :  { %v2308_v55 = vadd.f32 %v446_v3, %v445_v58  ;;  %v3163_v58 = vld [vmem:[#allocation20_spill] sm:$0xff]  ;;  %v3164_v3 = vld [vmem:[#allocation17_spill] sm:$0xff] }
 0x1ec   :  { %1617 = vtanh.f32 %v2308_v55 }
 0x1f9   :  { %v1618_v52 = vpop.eup %1617 }
 0x1fa   :  { %v449_v49 = vmul.f32 %v1618_v52, %v444_v59  ;;  %v3167_v59 = vld [vmem:[#allocation23_spill] sm:$0xff]  ;;  %v3168_v52 = vld [vmem:[#allocation21_spill] sm:$0xff] }
 0x1fc   :  { %539 = vmatmul.mubr.f32.vlgmr.msra.gmra.mxu0 %v449_v49  ;;  %610 = vmatmul.mubr.f32.vlgmr.msra.gmra.mxu1 %v449_v49  ;;  %v3169_v49 = vmov 0.0  }
 0x1fd   :  { %659 = vmatpush1.msra.mxu0 %v1778_v1  ;;  %730 = vmatpush1.msra.mxu1 %v1814_v8 }
 0x1fe   :  { %660 = vmatprep.subr.mxu0 %v1783_v2  ;;  %731 = vmatprep.subr.mxu1 %v1819_v9 }
 0x1ff   :  { %661 = vmatpush1.msra.mxu0 %v1791_v4  ;;  %732 = vmatpush1.msra.mxu1 %v1831_v11 }
 0x200   :  { %662 = vmatprep.subr.mxu0 %v1797_v5  ;;  %733 = vmatprep.subr.mxu1 %v1843_v13 }
 0x201   :  { %663 = vmatpush1.msra.mxu0 %v1808_v7  ;;  %734 = vmatpush1.msra.mxu1 %v1848_v14 }
 0x202   :  { %664 = vmatprep.subr.mxu0 %v1825_v10  ;;  %735 = vmatprep.subr.mxu1 %v1860_v16 }
 0x203   :  { %665 = vmatpush1.msra.mxu0 %v1837_v12  ;;  %736 = vmatpush1.msra.mxu1 %v1872_v18 }
 0x204   :  { %666 = vmatprep.subr.mxu0 %v1854_v15  ;;  %737 = vmatprep.subr.mxu1 %v1884_v20 }
 0x205   :  { %667 = vmatpush1.msra.mxu0 %v1866_v17  ;;  %738 = vmatpush1.msra.mxu1 %v1896_v22 }
 0x206   :  { %668 = vmatprep.subr.mxu0 %v1878_v19  ;;  %739 = vmatprep.subr.mxu1 %v1908_v24 }
 0x207   :  { %669 = vmatpush1.msra.mxu0 %v1890_v21  ;;  %740 = vmatpush1.msra.mxu1 %v1920_v26 }
 0x208   :  { %670 = vmatprep.subr.mxu0 %v1902_v23  ;;  %741 = vmatprep.subr.mxu1 %v1932_v28 }
 0x209   :  { %671 = vmatpush1.msra.mxu0 %v1914_v25  ;;  %742 = vmatpush1.msra.mxu1 %v1944_v30 }
 0x20a   :  { %672 = vmatprep.subr.mxu0 %v1926_v27  ;;  %743 = vmatprep.subr.mxu1 %v1956_v32 }
 0x20b   :  { %673 = vmatpush1.msra.mxu0 %v1938_v29  ;;  %744 = vmatpush1.msra.mxu1 %v1968_v34 }
 0x20c   :  { %674 = vmatprep.subr.mxu0 %v1950_v31  ;;  %745 = vmatprep.subr.mxu1 %v1980_v36 }
 0x20d   :  { %675 = vmatpush1.msra.mxu0 %v1962_v33  ;;  %746 = vmatpush1.msra.mxu1 %v1992_v38 }
 0x20e   :  { %676 = vmatprep.subr.mxu0 %v1974_v35  ;;  %747 = vmatprep.subr.mxu1 %v2004_v40 }
 0x20f   :  { %677 = vmatpush1.msra.mxu0 %v1986_v37  ;;  %748 = vmatpush1.msra.mxu1 %v2016_v42 }
 0x210   :  { %678 = vmatprep.subr.mxu0 %v1998_v39  ;;  %749 = vmatprep.subr.mxu1 %v2028_v44 }
 0x211   :  { %679 = vmatpush1.msra.mxu0 %v2010_v41  ;;  %750 = vmatpush1.msra.mxu1 %v2040_v46 }
 0x212   :  { %680 = vmatprep.subr.mxu0 %v3150_v43  ;;  %751 = vmatprep.subr.mxu1 %v3151_v6 }
 0x213   :  { %681 = vmatpush1.msra.mxu0 %v3152_v45  ;;  %752 = vmatpush1.msra.mxu1 %v3153_v47 }
 0x214   :  { %682 = vmatprep.subr.mxu0 %v3154_v48  ;;  %753 = vmatprep.subr.mxu1 %v3155_v57 }
 0x215   :  { %683 = vmatpush1.msra.mxu0 %v3156_v53  ;;  %754 = vmatpush1.msra.mxu1 %v3157_v54 }
 0x216   :  { %684 = vmatprep.subr.mxu0 %v3158_v60  ;;  %755 = vmatprep.subr.mxu1 %v3159_v56  ;;  %v3170_v56 = vld [vmem:[#allocation24_spill] sm:$0xff] }
 0x217   :  { %685 = vmatpush1.msra.mxu0 %v3160_v62  ;;  %756 = vmatpush1.msra.mxu1 %v3161_v51  ;;  %v3171_v51 = vld [vmem:[#allocation3_spill] sm:$0xff] }
 0x218   :  { %686 = vmatprep.subr.mxu0 %v3162_v0  ;;  %757 = vmatprep.subr.mxu1 %v3163_v58  ;;  %v3172_v0 = vld [vmem:[#allocation4_spill] sm:$0xff] }
 0x219   :  { %687 = vmatpush1.msra.mxu0 %v3164_v3  ;;  %758 = vmatpush1.msra.mxu1 %v3165_v50  ;;  %v1581_v50 = vld [vmem:[%s3016_s0 + $0x10] sm:$0xff] }
 0x21a   :  { %688 = vmatprep.subr.mxu0 %v3166_v61  ;;  %759 = vmatprep.subr.mxu1 %v3167_v59  ;;  %v460_v61 = vrot.slane %v1581_v50, %v3149_v63  ;;  %v453_v3 = vcombine.high %v1581_v50, %v1581_v50 }
 0x21b   :  { %689 = vmatpush1.msra.mxu0 %v3168_v52  ;;  %722 = vmatprep.mubr.f32.mxu0 %v3169_v49 }
 0x21c   :  { %760 = vmatpush1.msra.mxu1 %v3170_v56  ;;  %793 = vmatprep.mubr.f32.mxu1 %v3169_v49  ;;  %v468_v59 = vcombine.high %v460_v61, %v460_v61  ;;  %v467_v56 = vrot.slane %v453_v3, %v3149_v63 }
 0x21d   :  { %842 = vmatprep.subr.mxu0 %v3171_v51  ;;  %913 = vmatprep.subr.mxu1 %v3172_v0 }
 0x21e   :  { %v469_v0 = vcombine.high %v467_v56, %v467_v56 }
 0x2bc   :  { %v540_v58 = vpop.f32.mrf.mxu0  ;;  %v611_v49 = vpop.f32.mrf.mxu1 }
 0x2bd   :  { %v541_v52 = vadd.f32 %v540_v58, %v460_v61  ;;  %v612_v53 = vadd.f32 %v611_v49, %v467_v56 }
 0x2be   :  { %v542_v62 = vpop.f32.mrf.mxu0  ;;  %v613_v57 = vpop.f32.mrf.mxu1 }
 0x2bf   :  { %v616_v60 = vmul.f32 0.5, %v541_v52  ;;  %v543_v54 = vadd.f32 %v542_v62, %v468_v59  ;;  %v614_v48 = vadd.f32 %v613_v57, %v469_v0 }
 0x2c1   :  { %1619 = vtanh.f32 %v616_v60  ;;  %v620_v51 = vmul.f32 0.5, %v543_v54  ;;  %v625_v47 = vmul.f32 0.5, %v614_v48 }
 0x2c3   :  { %1621 = vtanh.f32 %v620_v51 }
 0x2c4   :  { %1623 = vtanh.f32 %v612_v53 }
 0x2c5   :  { %1625 = vtanh.f32 %v625_v47 }
 0x2ce   :  { %v1620_v45 = vpop.eup %1619 }
 0x2cf   :  { %v618_v50 = vmul.f32 0.5, %v1620_v45 }
 0x2d0   :  { %v1622_v6 = vpop.eup %1621 }
 0x2d1   :  { %v619_v43 = vadd.f32 0.5, %v618_v50  ;;  %v622_v58 = vmul.f32 0.5, %v1622_v6  ;;  %v1624_v52 = vpop.eup %1623 }
 0x2d2   :  { %v1626_v54 = vpop.eup %1625 }
 0x2d3   :  { %v623_v61 = vadd.f32 0.5, %v622_v58  ;;  %v630_v3 = vmul.f32 %v1624_v52, %v619_v43  ;;  %v627_v56 = vmul.f32 0.5, %v1626_v54  ;;  %v2492_v54 = vld [vmem:[%s3015_s1 + $0x1d8] sm:$0xff] }
 0x2d5   :  { %v629_v62 = vmul.f32 %v623_v61, %v2308_v55  ;;  %v628_v53 = vadd.f32 0.5, %v627_v56  ;;  %v2498_v56 = vld [vmem:[%s3015_s1 + $0x1c0] sm:$0xff] }
 0x2d7   :  { %v2383_v60 = vadd.f32 %v630_v3, %v629_v62  ;;  %v2474_v62 = vld [vmem:[%s3015_s1 + $0x1e0] sm:$0xff]  ;;  %v2480_v3 = vld [vmem:[%s3015_s1 + $0x1f0] sm:$0xff] }
 0x2d9   :  { %1627 = vtanh.f32 %v2383_v60 }
 0x2e6   :  { %v1628_v57 = vpop.eup %1627 }
 0x2e7   :  { %v633_v48 = vmul.f32 %v1628_v57, %v628_v53  ;;  %v2504_v53 = vld [vmem:[%s3015_s1 + $0x1d0] sm:$0xff]  ;;  %v2510_v57 = vld [vmem:[%s3015_s1 + $0x1a8] sm:$0xff] }
 0x2e9   :  { %723 = vmatmul.mubr.f32.vlgmr.msra.gmra.mxu0 %v633_v48  ;;  %794 = vmatmul.mubr.f32.vlgmr.msra.gmra.mxu1 %v633_v48  ;;  %v2516_v48 = vld [vmem:[%s3015_s1 + $0x1b8] sm:$0xff] }
 0x2ea   :  { %843 = vmatpush1.msra.mxu0 %v1778_v1  ;;  %914 = vmatpush1.msra.mxu1 %v1814_v8  ;;  %v3173_v1 = vld [vmem:[#allocation5_spill] sm:$0xff]  ;;  %v3178_v8 = vld [vmem:[#allocation12_spill] sm:$0xff] }
 0x2eb   :  { %844 = vmatprep.subr.mxu0 %v1783_v2  ;;  %915 = vmatprep.subr.mxu1 %v1819_v9  ;;  %v3174_v2 = vld [vmem:[#allocation8_spill] sm:$0xff]  ;;  %v3179_v9 = vld [vmem:[#allocation9_spill] sm:$0xff] }
 0x2ec   :  { %845 = vmatpush1.msra.mxu0 %v1791_v4  ;;  %916 = vmatpush1.msra.mxu1 %v1831_v11  ;;  %v3175_v4 = vld [vmem:[#allocation6_spill] sm:$0xff]  ;;  %v3181_v11 = vld [vmem:[#allocation11_spill] sm:$0xff] }
 0x2ed   :  { %846 = vmatprep.subr.mxu0 %v1797_v5  ;;  %917 = vmatprep.subr.mxu1 %v1843_v13  ;;  %v3176_v5 = vld [vmem:[#allocation10_spill] sm:$0xff]  ;;  %v3183_v13 = vld [vmem:[#allocation13_spill] sm:$0xff] }
 0x2ee   :  { %847 = vmatpush1.msra.mxu0 %v1808_v7  ;;  %918 = vmatpush1.msra.mxu1 %v1848_v14  ;;  %v3177_v7 = vld [vmem:[#allocation7_spill] sm:$0xff]  ;;  %v3184_v14 = vld [vmem:[#allocation18_spill] sm:$0xff] }
 0x2ef   :  { %848 = vmatprep.subr.mxu0 %v1825_v10  ;;  %919 = vmatprep.subr.mxu1 %v1860_v16  ;;  %v3180_v10 = vld [vmem:[#allocation14_spill] sm:$0xff]  ;;  %v3186_v16 = vld [vmem:[#allocation20_spill] sm:$0xff] }
 0x2f0   :  { %849 = vmatpush1.msra.mxu0 %v1837_v12  ;;  %920 = vmatpush1.msra.mxu1 %v1872_v18  ;;  %v3182_v12 = vld [vmem:[#allocation16_spill] sm:$0xff]  ;;  %v3188_v18 = vld [vmem:[#allocation22_spill] sm:$0xff] }
 0x2f1   :  { %850 = vmatprep.subr.mxu0 %v1854_v15  ;;  %921 = vmatprep.subr.mxu1 %v1884_v20  ;;  %v3185_v15 = vld [vmem:[#allocation15_spill] sm:$0xff] }
 0x2f2   :  { %851 = vmatpush1.msra.mxu0 %v1866_v17  ;;  %922 = vmatpush1.msra.mxu1 %v1896_v22  ;;  %v3187_v17 = vld [vmem:[#allocation17_spill] sm:$0xff]  ;;  %v3190_v20 = vld [vmem:[#allocation23_spill] sm:$0xff]  ;;  %v3192_v22 = vmov 0.0  }
 0x2f3   :  { %852 = vmatprep.subr.mxu0 %v1878_v19  ;;  %923 = vmatprep.subr.mxu1 %v1908_v24  ;;  %v3189_v19 = vld [vmem:[#allocation19_spill] sm:$0xff] }
 0x2f4   :  { %853 = vmatpush1.msra.mxu0 %v1890_v21  ;;  %924 = vmatpush1.msra.mxu1 %v1920_v26  ;;  %v3191_v21 = vld [vmem:[#allocation21_spill] sm:$0xff]  ;;  %v2453_v24 = vld [vmem:[%s3015_s1 + $0x1e8] sm:$0xff] }
 0x2f5   :  { %854 = vmatprep.subr.mxu0 %v1902_v23  ;;  %925 = vmatprep.subr.mxu1 %v1932_v28  ;;  %v3193_v23 = vld [vmem:[#allocation24_spill] sm:$0xff]  ;;  %3194 = vst [vmem:[#allocation25_spill] sm:$0xff] %v2453_v24  ;;  %v1582_v26 = vld [vmem:[%s3016_s0 + $0x18] sm:$0xff] }
 0x2f6   :  { %855 = vmatpush1.msra.mxu0 %v1914_v25  ;;  %926 = vmatpush1.msra.mxu1 %v1944_v30  ;;  %v2459_v25 = vld [vmem:[%s3015_s1 + $0x1f8] sm:$0xff]  ;;  %v637_v28 = vcombine.high %v1582_v26, %v1582_v26 }
 0x2f7   :  { %856 = vmatprep.subr.mxu0 %v1926_v27  ;;  %927 = vmatprep.subr.mxu1 %v1956_v32  ;;  %3195 = vst [vmem:[#allocation3_spill] sm:$0xff] %v2459_v25  ;;  %v644_v27 = vrot.slane %v1582_v26, %v3149_v63  ;;  %v2564_v26 = vld [vmem:[%s3015_s1 + $0x178] sm:$0xff] }
 0x2f8   :  { %857 = vmatpush1.msra.mxu0 %v1938_v29  ;;  %928 = vmatpush1.msra.mxu1 %v1968_v34  ;;  %v651_v34 = vrot.slane %v637_v28, %v3149_v63  ;;  %v2576_v28 = vld [vmem:[%s3015_s1 + $0x170] sm:$0xff] }
 0x2f9   :  { %858 = vmatprep.subr.mxu0 %v1950_v31  ;;  %929 = vmatprep.subr.mxu1 %v1980_v36  ;;  %v652_v29 = vcombine.high %v644_v27, %v644_v27 }
 0x2fa   :  { %859 = vmatpush1.msra.mxu0 %v1962_v33  ;;  %930 = vmatpush1.msra.mxu1 %v1992_v38 }
 0x2fb   :  { %860 = vmatprep.subr.mxu0 %v1974_v35  ;;  %931 = vmatprep.subr.mxu1 %v2004_v40 }
 0x2fc   :  { %861 = vmatpush1.msra.mxu0 %v1986_v37  ;;  %932 = vmatpush1.msra.mxu1 %v2016_v42 }
 0x2fd   :  { %862 = vmatprep.subr.mxu0 %v1998_v39  ;;  %933 = vmatprep.subr.mxu1 %v2028_v44  ;;  %v653_v39 = vcombine.high %v651_v34, %v651_v34 }
 0x2fe   :  { %863 = vmatpush1.msra.mxu0 %v2010_v41  ;;  %934 = vmatpush1.msra.mxu1 %v2040_v46 }
 0x2ff   :  { %864 = vmatprep.subr.mxu0 %v3173_v1  ;;  %935 = vmatprep.subr.mxu1 %v3174_v2  ;;  %v2522_v1 = vld [vmem:[%s3015_s1 + $0x1a0] sm:$0xff]  ;;  %v2528_v2 = vld [vmem:[%s3015_s1 + $0x1b0] sm:$0xff] }
 0x300   :  { %865 = vmatpush1.msra.mxu0 %v3175_v4  ;;  %936 = vmatpush1.msra.mxu1 %v3176_v5  ;;  %v2534_v4 = vld [vmem:[%s3015_s1 + $0x188] sm:$0xff] }
 0x301   :  { %866 = vmatprep.subr.mxu0 %v3177_v7  ;;  %937 = vmatprep.subr.mxu1 %v3178_v8  ;;  %v2540_v7 = vld [vmem:[%s3015_s1 + $0x198] sm:$0xff] }
 0x302   :  { %867 = vmatpush1.msra.mxu0 %v3179_v9  ;;  %938 = vmatpush1.msra.mxu1 %v3180_v10  ;;  %v2546_v9 = vld [vmem:[%s3015_s1 + $0x180] sm:$0xff] }
 0x303   :  { %868 = vmatprep.subr.mxu0 %v3181_v11  ;;  %939 = vmatprep.subr.mxu1 %v3182_v12  ;;  %v2552_v11 = vld [vmem:[%s3015_s1 + $0x190] sm:$0xff] }
 0x304   :  { %869 = vmatpush1.msra.mxu0 %v3183_v13  ;;  %940 = vmatpush1.msra.mxu1 %v3184_v14  ;;  %v2558_v13 = vld [vmem:[%s3015_s1 + $0x168] sm:$0xff] }
 0x305   :  { %870 = vmatprep.subr.mxu0 %v3185_v15  ;;  %941 = vmatprep.subr.mxu1 %v3186_v16 }
 0x306   :  { %871 = vmatpush1.msra.mxu0 %v3187_v17  ;;  %942 = vmatpush1.msra.mxu1 %v3188_v18 }
 0x307   :  { %872 = vmatprep.subr.mxu0 %v3189_v19  ;;  %943 = vmatprep.subr.mxu1 %v3190_v20 }
 0x308   :  { %873 = vmatpush1.msra.mxu0 %v3191_v21  ;;  %906 = vmatprep.mubr.f32.mxu0 %v3192_v22 }
 0x309   :  { %944 = vmatpush1.msra.mxu1 %v3193_v23  ;;  %977 = vmatprep.mubr.f32.mxu1 %v3192_v22 }
 0x30a   :  { %1026 = vmatprep.subr.mxu0 %v2453_v24  ;;  %1097 = vmatprep.subr.mxu1 %v2459_v25 }
 0x3a9   :  { %v724_v30 = vpop.f32.mrf.mxu0  ;;  %v795_v36 = vpop.f32.mrf.mxu1 }
 0x3aa   :  { %v725_v31 = vadd.f32 %v724_v30, %v644_v27  ;;  %v796_v38 = vadd.f32 %v795_v36, %v651_v34  ;;  %v2570_v27 = vld [vmem:[%s3015_s1 + $0x160] sm:$0xff]  ;;  %v2588_v30 = vld [vmem:[%s3015_s1 + $0x158] sm:$0xff]  ;;  %v2624_v36 = vld [vmem:[%s3015_s1 + $0x130] sm:$0xff] }
 0x3ab   :  { %v726_v32 = vpop.f32.mrf.mxu0  ;;  %v797_v40 = vpop.f32.mrf.mxu1  ;;  %v2612_v34 = vld [vmem:[%s3015_s1 + $0x138] sm:$0xff] }
 0x3ac   :  { %v800_v33 = vmul.f32 0.5, %v725_v31  ;;  %v727_v35 = vadd.f32 %v726_v32, %v652_v29  ;;  %v798_v41 = vadd.f32 %v797_v40, %v653_v39  ;;  %v2582_v29 = vld [vmem:[%s3015_s1 + $0x148] sm:$0xff]  ;;  %v2594_v31 = vld [vmem:[%s3015_s1 + $0x140] sm:$0xff]  ;;  %v2600_v32 = vld [vmem:[%s3015_s1 + $0x150] sm:$0xff] }
 0x3ad   :  { %v2642_v39 = vld [vmem:[%s3015_s1 + $0x100] sm:$0xff]  ;;  %v2648_v40 = vld [vmem:[%s3015_s1 + $0x110] sm:$0xff] }
 0x3ae   :  { %1629 = vtanh.f32 %v800_v33  ;;  %v804_v37 = vmul.f32 0.5, %v727_v35  ;;  %v809_v42 = vmul.f32 0.5, %v798_v41  ;;  %v2606_v33 = vld [vmem:[%s3015_s1 + $0x128] sm:$0xff]  ;;  %v2618_v35 = vld [vmem:[%s3015_s1 + $0x120] sm:$0xff] }
 0x3af   :  { %v2654_v41 = vld [vmem:[%s3015_s1 + $0xe8] sm:$0xff] }
 0x3b0   :  { %1631 = vtanh.f32 %v804_v37  ;;  %v2630_v37 = vld [vmem:[%s3015_s1 + $0x108] sm:$0xff] }
 0x3b1   :  { %1633 = vtanh.f32 %v796_v38  ;;  %v2636_v38 = vld [vmem:[%s3015_s1 + $0x118] sm:$0xff] }
 0x3b2   :  { %1635 = vtanh.f32 %v809_v42  ;;  %v2660_v42 = vld [vmem:[%s3015_s1 + $0xf8] sm:$0xff] }
 0x3bb   :  { %v1630_v44 = vpop.eup %1629 }
 0x3bc   :  { %v802_v46 = vmul.f32 0.5, %v1630_v44  ;;  %v2666_v44 = vld [vmem:[%s3015_s1 + $0xe0] sm:$0xff] }
 0x3bd   :  { %v1632_v55 = vpop.eup %1631 }
 0x3be   :  { %v803_v43 = vadd.f32 0.5, %v802_v46  ;;  %v806_v6 = vmul.f32 0.5, %v1632_v55  ;;  %v1634_v47 = vpop.eup %1633  ;;  %v2672_v46 = vld [vmem:[%s3015_s1 + $0xf0] sm:$0xff]  ;;  %v2678_v55 = vld [vmem:[%s3015_s1 + $0xc8] sm:$0xff] }
 0x3bf   :  { %v1636_v0 = vpop.eup %1635 }
 0x3c0   :  { %v807_v45 = vadd.f32 0.5, %v806_v6  ;;  %v814_v49 = vmul.f32 %v1634_v47, %v803_v43  ;;  %v811_v50 = vmul.f32 0.5, %v1636_v0  ;;  %v2684_v43 = vld [vmem:[%s3015_s1 + $0xd8] sm:$0xff]  ;;  %v2690_v6 = vld [vmem:[%s3015_s1 + $0xc0] sm:$0xff]  ;;  %v2702_v47 = vld [vmem:[%s3015_s1 + $0xa8] sm:$0xff] }
 0x3c1   :  { %v2720_v0 = vld [vmem:[%s3015_s1 + $0xb0] sm:$0xff] }
 0x3c2   :  { %v813_v59 = vmul.f32 %v807_v45, %v2383_v60  ;;  %v812_v58 = vadd.f32 0.5, %v811_v50  ;;  %v2486_v60 = vld [vmem:[%s3015_s1 + $0x1c8] sm:$0xff]  ;;  %v2696_v45 = vld [vmem:[%s3015_s1 + $0xd0] sm:$0xff] }
 0x3c3   :  { %v2726_v50 = vld [vmem:[%s3015_s1 + $0x88] sm:$0xff] }
 0x3c4   :  { %v2468_v51 = vadd.f32 %v814_v49, %v813_v59  ;;  %v2708_v59 = vld [vmem:[%s3015_s1 + $0xb8] sm:$0xff]  ;;  %v2714_v49 = vld [vmem:[%s3015_s1 + $0xa0] sm:$0xff]  ;;  %3196 = vst [vmem:[#allocation4_spill] sm:$0xff] %v2726_v50 }
 0x3c6   :  { %1637 = vtanh.f32 %v2468_v51 }
 0x3d3   :  { %v1638_v61 = vpop.eup %1637 }
 0x3d4   :  { %v817_v52 = vmul.f32 %v1638_v61, %v812_v58  ;;  %v2732_v58 = vld [vmem:[%s3015_s1 + $0x98] sm:$0xff]  ;;  %v2738_v61 = vld [vmem:[%s3015_s1 + $0x80] sm:$0xff] }
 0x3d5   :  { %3197 = vst [vmem:[#allocation5_spill] sm:$0xff] %v2732_v58  ;;  %3198 = vst [vmem:[#allocation8_spill] sm:$0xff] %v2738_v61 }
 0x3d6   :  { %907 = vmatmul.mubr.f32.vlgmr.msra.gmra.mxu0 %v817_v52  ;;  %978 = vmatmul.mubr.f32.vlgmr.msra.gmra.mxu1 %v817_v52  ;;  %v2745_v52 = vld [vmem:[%s3015_s1 + $0x68] sm:$0xff] }
 0x3d7   :  { %1027 = vmatpush1.msra.mxu0 %v2474_v62  ;;  %1098 = vmatpush1.msra.mxu1 %v2480_v3  ;;  %3199 = vst [vmem:[#allocation6_spill] sm:$0xff] %v2745_v52 }
 0x3d8   :  { %1028 = vmatprep.subr.mxu0 %v2486_v60  ;;  %1099 = vmatprep.subr.mxu1 %v2492_v54 }
 0x3d9   :  { %1029 = vmatpush1.msra.mxu0 %v2498_v56  ;;  %1100 = vmatpush1.msra.mxu1 %v2504_v53 }
 0x3da   :  { %1030 = vmatprep.subr.mxu0 %v2510_v57  ;;  %1101 = vmatprep.subr.mxu1 %v2516_v48 }
 0x3db   :  { %1031 = vmatpush1.msra.mxu0 %v2522_v1  ;;  %1102 = vmatpush1.msra.mxu1 %v2528_v2 }
 0x3dc   :  { %1032 = vmatprep.subr.mxu0 %v2534_v4  ;;  %1103 = vmatprep.subr.mxu1 %v2540_v7 }
 0x3dd   :  { %1033 = vmatpush1.msra.mxu0 %v2546_v9  ;;  %1104 = vmatpush1.msra.mxu1 %v2552_v11 }
 0x3de   :  { %1034 = vmatprep.subr.mxu0 %v2558_v13  ;;  %1105 = vmatprep.subr.mxu1 %v2564_v26 }
 0x3df   :  { %1035 = vmatpush1.msra.mxu0 %v2570_v27  ;;  %1106 = vmatpush1.msra.mxu1 %v2576_v28 }
 0x3e0   :  { %1036 = vmatprep.subr.mxu0 %v2582_v29  ;;  %1107 = vmatprep.subr.mxu1 %v2588_v30 }
 0x3e1   :  { %1037 = vmatpush1.msra.mxu0 %v2594_v31  ;;  %1108 = vmatpush1.msra.mxu1 %v2600_v32 }
 0x3e2   :  { %1038 = vmatprep.subr.mxu0 %v2606_v33  ;;  %1109 = vmatprep.subr.mxu1 %v2612_v34 }
 0x3e3   :  { %1039 = vmatpush1.msra.mxu0 %v2618_v35  ;;  %1110 = vmatpush1.msra.mxu1 %v2624_v36 }
 0x3e4   :  { %1040 = vmatprep.subr.mxu0 %v2630_v37  ;;  %1111 = vmatprep.subr.mxu1 %v2636_v38 }
 0x3e5   :  { %1041 = vmatpush1.msra.mxu0 %v2642_v39  ;;  %1112 = vmatpush1.msra.mxu1 %v2648_v40 }
 0x3e6   :  { %1042 = vmatprep.subr.mxu0 %v2654_v41  ;;  %1113 = vmatprep.subr.mxu1 %v2660_v42 }
 0x3e7   :  { %1043 = vmatpush1.msra.mxu0 %v2666_v44  ;;  %1114 = vmatpush1.msra.mxu1 %v2672_v46 }
 0x3e8   :  { %1044 = vmatprep.subr.mxu0 %v2678_v55  ;;  %1115 = vmatprep.subr.mxu1 %v2684_v43 }
 0x3e9   :  { %1045 = vmatpush1.msra.mxu0 %v2690_v6  ;;  %1116 = vmatpush1.msra.mxu1 %v2696_v45 }
 0x3ea   :  { %1046 = vmatprep.subr.mxu0 %v2702_v47  ;;  %1117 = vmatprep.subr.mxu1 %v2708_v59 }
 0x3eb   :  { %1047 = vmatpush1.msra.mxu0 %v2714_v49  ;;  %1118 = vmatpush1.msra.mxu1 %v2720_v0 }
 0x3ec   :  { %1048 = vmatprep.subr.mxu0 %v2726_v50  ;;  %1119 = vmatprep.subr.mxu1 %v2732_v58  ;;  %v2752_v58 = vld [vmem:[%s3015_s1 + $0x60] sm:$0xff] }
 0x3ed   :  { %1049 = vmatpush1.msra.mxu0 %v2738_v61  ;;  %1120 = vmatpush1.msra.mxu1 %v3176_v5  ;;  %3200 = vst [vmem:[#allocation10_spill] sm:$0xff] %v2752_v58  ;;  %v2759_v5 = vld [vmem:[%s3015_s1 + $0x48] sm:$0xff] }
 0x3ee   :  { %1050 = vmatprep.subr.mxu0 %v2745_v52  ;;  %1121 = vmatprep.subr.mxu1 %v3178_v8  ;;  %3201 = vst [vmem:[#allocation7_spill] sm:$0xff] %v2759_v5  ;;  %v2766_v8 = vld [vmem:[%s3015_s1 + $0x40] sm:$0xff] }
 0x3ef   :  { %1051 = vmatpush1.msra.mxu0 %v2752_v58  ;;  %1122 = vmatpush1.msra.mxu1 %v3180_v10  ;;  %3202 = vst [vmem:[#allocation12_spill] sm:$0xff] %v2766_v8  ;;  %v1583_v10 = vld [vmem:[%s3016_s0 + $0x20] sm:$0xff] }
 0x3f0   :  { %1052 = vmatprep.subr.mxu0 %v2759_v5  ;;  %1123 = vmatprep.subr.mxu1 %v3182_v12  ;;  %v828_v12 = vrot.slane %v1583_v10, %v3149_v63 }
 0x3f1   :  { %1053 = vmatpush1.msra.mxu0 %v2766_v8  ;;  %1124 = vmatpush1.msra.mxu1 %v3184_v14  ;;  %v821_v14 = vcombine.high %v1583_v10, %v1583_v10 }
 0x3f2   :  { %1054 = vmatprep.subr.mxu0 %v3185_v15  ;;  %1125 = vmatprep.subr.mxu1 %v3186_v16  ;;  %v836_v15 = vcombine.high %v828_v12, %v828_v12 }
 0x3f3   :  { %1055 = vmatpush1.msra.mxu0 %v3187_v17  ;;  %1126 = vmatpush1.msra.mxu1 %v3188_v18 }
 0x3f4   :  { %1056 = vmatprep.subr.mxu0 %v3189_v19  ;;  %1127 = vmatprep.subr.mxu1 %v3190_v20  ;;  %v835_v20 = vrot.slane %v821_v14, %v3149_v63 }
 0x3f5   :  { %1057 = vmatpush1.msra.mxu0 %v3191_v21  ;;  %1090 = vmatprep.mubr.f32.mxu0 %v3192_v22 }
 0x3f6   :  { %1128 = vmatpush1.msra.mxu1 %v3193_v23  ;;  %1161 = vmatprep.mubr.f32.mxu1 %v3192_v22 }
 0x3f7   :  { %1210 = vmatprep.subr.mxu0 %v2453_v24  ;;  %1281 = vmatprep.subr.mxu1 %v2459_v25  ;;  %v837_v25 = vcombine.high %v835_v20, %v835_v20 }
 0x496   :  { %v908_v16 = vpop.f32.mrf.mxu0  ;;  %v979_v23 = vpop.f32.mrf.mxu1 }
 0x497   :  { %v909_v17 = vadd.f32 %v908_v16, %v828_v12  ;;  %v980_v22 = vadd.f32 %v979_v23, %v835_v20  ;;  %v3209_v20 = vld [vmem:[#allocation10_spill] sm:$0xff]  ;;  %v3211_v23 = vld [vmem:[#allocation7_spill] sm:$0xff] }
 0x498   :  { %v910_v18 = vpop.f32.mrf.mxu0  ;;  %v981_v8 = vpop.f32.mrf.mxu1 }
 0x499   :  { %v984_v19 = vmul.f32 0.5, %v909_v17  ;;  %v911_v21 = vadd.f32 %v910_v18, %v836_v15  ;;  %v982_v5 = vadd.f32 %v981_v8, %v837_v25  ;;  %v2846_v8 = vld [vmem:[%s3015_s1 + $0x78] sm:$0xff] }
 0x49a   :  { %3208 = vst [vmem:[#allocation14_spill] sm:$0xff] %v2846_v8 }
 0x49b   :  { %1639 = vtanh.f32 %v984_v19  ;;  %v988_v24 = vmul.f32 0.5, %v911_v21  ;;  %v993_v58 = vmul.f32 0.5, %v982_v5  ;;  %v2853_v21 = vld [vmem:[%s3015_s1 + $0x70] sm:$0xff] }
 0x49c   :  { %3210 = vst [vmem:[#allocation11_spill] sm:$0xff] %v2853_v21 }
 0x49d   :  { %1641 = vtanh.f32 %v988_v24 }
 0x49e   :  { %1643 = vtanh.f32 %v980_v22 }
 0x49f   :  { %1645 = vtanh.f32 %v993_v58  ;;  %v3205_v58 = vld [vmem:[#allocation8_spill] sm:$0xff] }
 0x4a8   :  { %v1640_v52 = vpop.eup %1639 }
 0x4a9   :  { %v986_v10 = vmul.f32 0.5, %v1640_v52  ;;  %v3207_v52 = vld [vmem:[#allocation6_spill] sm:$0xff] }
 0x4aa   :  { %v1642_v61 = vpop.eup %1641 }
 0x4ab   :  { %v987_v50 = vadd.f32 0.5, %v986_v10  ;;  %v990_v12 = vmul.f32 0.5, %v1642_v61  ;;  %v1644_v17 = vpop.eup %1643  ;;  %v2839_v61 = vld [vmem:[%s3015_s1 + $0x90] sm:$0xff]  ;;  %v2860_v10 = vld [vmem:[%s3015_s1 + $0x58] sm:$0xff] }
 0x4ac   :  { %v1646_v24 = vpop.eup %1645  ;;  %3206 = vst [vmem:[#allocation9_spill] sm:$0xff] %v2839_v61  ;;  %3212 = vst [vmem:[#allocation16_spill] sm:$0xff] %v2860_v10 }
 0x4ad   :  { %v991_v16 = vadd.f32 0.5, %v990_v12  ;;  %v998_v15 = vmul.f32 %v1644_v17, %v987_v50  ;;  %v995_v19 = vmul.f32 0.5, %v1646_v24  ;;  %v3204_v50 = vld [vmem:[#allocation5_spill] sm:$0xff]  ;;  %v3213_v12 = vld [vmem:[#allocation12_spill] sm:$0xff] }
 0x4ae   :  { %v2873_v17 = vld [vmem:[%s3015_s1 + $0x28] sm:$0xff]  ;;  %v2891_v24 = vld [vmem:[%s3015_s1 + $0x30] sm:$0xff] }
 0x4af   :  { %v997_v14 = vmul.f32 %v991_v16, %v2468_v51  ;;  %v996_v22 = vadd.f32 0.5, %v995_v19  ;;  %v3203_v51 = vld [vmem:[#allocation4_spill] sm:$0xff]  ;;  %3215 = vst [vmem:[#allocation18_spill] sm:$0xff] %v2873_v17  ;;  %3218 = vst [vmem:[#allocation17_spill] sm:$0xff] %v2891_v24 }
 0x4b0   :  { %v2867_v16 = vld [vmem:[%s3015_s1 + $0x50] sm:$0xff]  ;;  %v2897_v19 = vld [vmem:[%s3015_s1 + $0x8] sm:$0xff] }
 0x4b1   :  { %v2788_v18 = vadd.f32 %v998_v15, %v997_v14  ;;  %3214 = vst [vmem:[#allocation13_spill] sm:$0xff] %v2867_v16  ;;  %v2879_v14 = vld [vmem:[%s3015_s1 + $0x38] sm:$0xff]  ;;  %v2885_v15 = vld [vmem:[%s3015_s1 + $0x20] sm:$0xff]  ;;  %3219 = vst [vmem:[#allocation22_spill] sm:$0xff] %v2897_v19 }
 0x4b2   :  { %3216 = vst [vmem:[#allocation15_spill] sm:$0xff] %v2879_v14  ;;  %3217 = vst [vmem:[#allocation20_spill] sm:$0xff] %v2885_v15 }
 0x4b3   :  { %1647 = vtanh.f32 %v2788_v18 }
 0x4c0   :  { %v1648_v25 = vpop.eup %1647 }
 0x4c1   :  { %v1001_v5 = vmul.f32 %v1648_v25, %v996_v22  ;;  %v2903_v22 = vld [vmem:[%s3015_s1 + $0x18] sm:$0xff]  ;;  %v2909_v25 = vld [vmem:[%s3015_s1] sm:$0xff] }
 0x4c2   :  { %3220 = vst [vmem:[#allocation19_spill] sm:$0xff] %v2903_v22  ;;  %3221 = vst [vmem:[#allocation23_spill] sm:$0xff] %v2909_v25 }
 0x4c3   :  { %1091 = vmatmul.mubr.f32.vlgmr.msra.gmra.mxu0 %v1001_v5  ;;  %1162 = vmatmul.mubr.f32.vlgmr.msra.gmra.mxu1 %v1001_v5  ;;  %v3222_v5 = vmov 0.0  }
 0x4c4   :  { %1211 = vmatpush1.msra.mxu0 %v2474_v62  ;;  %1282 = vmatpush1.msra.mxu1 %v2480_v3 }
 0x4c5   :  { %1212 = vmatprep.subr.mxu0 %v2486_v60  ;;  %1283 = vmatprep.subr.mxu1 %v2492_v54 }
 0x4c6   :  { %1213 = vmatpush1.msra.mxu0 %v2498_v56  ;;  %1284 = vmatpush1.msra.mxu1 %v2504_v53 }
 0x4c7   :  { %1214 = vmatprep.subr.mxu0 %v2510_v57  ;;  %1285 = vmatprep.subr.mxu1 %v2516_v48 }
 0x4c8   :  { %1215 = vmatpush1.msra.mxu0 %v2522_v1  ;;  %1286 = vmatpush1.msra.mxu1 %v2528_v2 }
 0x4c9   :  { %1216 = vmatprep.subr.mxu0 %v2534_v4  ;;  %1287 = vmatprep.subr.mxu1 %v2540_v7 }
 0x4ca   :  { %1217 = vmatpush1.msra.mxu0 %v2546_v9  ;;  %1288 = vmatpush1.msra.mxu1 %v2552_v11 }
 0x4cb   :  { %1218 = vmatprep.subr.mxu0 %v2558_v13  ;;  %1289 = vmatprep.subr.mxu1 %v2564_v26 }
 0x4cc   :  { %1219 = vmatpush1.msra.mxu0 %v2570_v27  ;;  %1290 = vmatpush1.msra.mxu1 %v2576_v28 }
 0x4cd   :  { %1220 = vmatprep.subr.mxu0 %v2582_v29  ;;  %1291 = vmatprep.subr.mxu1 %v2588_v30 }
 0x4ce   :  { %1221 = vmatpush1.msra.mxu0 %v2594_v31  ;;  %1292 = vmatpush1.msra.mxu1 %v2600_v32 }
 0x4cf   :  { %1222 = vmatprep.subr.mxu0 %v2606_v33  ;;  %1293 = vmatprep.subr.mxu1 %v2612_v34 }
 0x4d0   :  { %1223 = vmatpush1.msra.mxu0 %v2618_v35  ;;  %1294 = vmatpush1.msra.mxu1 %v2624_v36 }
 0x4d1   :  { %1224 = vmatprep.subr.mxu0 %v2630_v37  ;;  %1295 = vmatprep.subr.mxu1 %v2636_v38 }
 0x4d2   :  { %1225 = vmatpush1.msra.mxu0 %v2642_v39  ;;  %1296 = vmatpush1.msra.mxu1 %v2648_v40 }
 0x4d3   :  { %1226 = vmatprep.subr.mxu0 %v2654_v41  ;;  %1297 = vmatprep.subr.mxu1 %v2660_v42 }
 0x4d4   :  { %1227 = vmatpush1.msra.mxu0 %v2666_v44  ;;  %1298 = vmatpush1.msra.mxu1 %v2672_v46 }
 0x4d5   :  { %1228 = vmatprep.subr.mxu0 %v2678_v55  ;;  %1299 = vmatprep.subr.mxu1 %v2684_v43 }
 0x4d6   :  { %1229 = vmatpush1.msra.mxu0 %v2690_v6  ;;  %1300 = vmatpush1.msra.mxu1 %v2696_v45 }
 0x4d7   :  { %1230 = vmatprep.subr.mxu0 %v2702_v47  ;;  %1301 = vmatprep.subr.mxu1 %v2708_v59 }
 0x4d8   :  { %1231 = vmatpush1.msra.mxu0 %v2714_v49  ;;  %1302 = vmatpush1.msra.mxu1 %v2720_v0 }
 0x4d9   :  { %1232 = vmatprep.subr.mxu0 %v3203_v51  ;;  %1303 = vmatprep.subr.mxu1 %v3204_v50 }
 0x4da   :  { %1233 = vmatpush1.msra.mxu0 %v3205_v58  ;;  %1304 = vmatpush1.msra.mxu1 %v2839_v61 }
 0x4db   :  { %1234 = vmatprep.subr.mxu0 %v3207_v52  ;;  %1305 = vmatprep.subr.mxu1 %v2846_v8 }
 0x4dc   :  { %1235 = vmatpush1.msra.mxu0 %v3209_v20  ;;  %1306 = vmatpush1.msra.mxu1 %v2853_v21 }
 0x4dd   :  { %1236 = vmatprep.subr.mxu0 %v3211_v23  ;;  %1307 = vmatprep.subr.mxu1 %v2860_v10 }
 0x4de   :  { %1237 = vmatpush1.msra.mxu0 %v3213_v12  ;;  %1308 = vmatpush1.msra.mxu1 %v2867_v16 }
 0x4df   :  { %1238 = vmatprep.subr.mxu0 %v2873_v17  ;;  %1309 = vmatprep.subr.mxu1 %v2879_v14 }
 0x4e0   :  { %1239 = vmatpush1.msra.mxu0 %v2885_v15  ;;  %1310 = vmatpush1.msra.mxu1 %v2891_v24  ;;  %v3224_v24 = vld [vmem:[#allocation25_spill] sm:$0xff]  ;;  %v1584_v15 = vld [vmem:[%s3016_s0 + $0x28] sm:$0xff] }
 0x4e1   :  { %1240 = vmatprep.subr.mxu0 %v2897_v19  ;;  %1311 = vmatprep.subr.mxu1 %v2903_v22  ;;  %v2916_v19 = vld [vmem:[%s3015_s1 + $0x10] sm:$0xff]  ;;  %v3225_v22 = vld [vmem:[#allocation3_spill] sm:$0xff]  ;;  %v1005_v14 = vcombine.high %v1584_v15, %v1584_v15 }
 0x4e2   :  { %1241 = vmatpush1.msra.mxu0 %v2909_v25  ;;  %1274 = vmatprep.mubr.f32.mxu0 %v3222_v5  ;;  %3223 = vst [vmem:[#allocation21_spill] sm:$0xff] %v2916_v19  ;;  %v1012_v25 = vrot.slane %v1584_v15, %v3149_v63 }
 0x4e3   :  { %1312 = vmatpush1.msra.mxu1 %v2916_v19  ;;  %1345 = vmatprep.mubr.f32.mxu1 %v3222_v5  ;;  %v1019_v19 = vrot.slane %v1005_v14, %v3149_v63 }
 0x4e4   :  { %1394 = vmatprep.subr.mxu0 %v3224_v24  ;;  %1465 = vmatprep.subr.mxu1 %v3225_v22  ;;  %v1020_v17 = vcombine.high %v1012_v25, %v1012_v25 }
 0x4e5   :  { %v1021_v22 = vcombine.high %v1019_v19, %v1019_v19 }
 0x583   :  { %v1092_v16 = vpop.f32.mrf.mxu0  ;;  %v1163_v5 = vpop.f32.mrf.mxu1 }
 0x584   :  { %v1093_v12 = vadd.f32 %v1092_v16, %v1012_v25  ;;  %v1164_v20 = vadd.f32 %v1163_v5, %v1019_v19 }
 0x585   :  { %v1094_v10 = vpop.f32.mrf.mxu0  ;;  %v1165_v8 = vpop.f32.mrf.mxu1 }
 0x586   :  { %v1168_v23 = vmul.f32 0.5, %v1093_v12  ;;  %v1095_v21 = vadd.f32 %v1094_v10, %v1020_v17  ;;  %v1166_v52 = vadd.f32 %v1165_v8, %v1021_v22 }
 0x588   :  { %1649 = vtanh.f32 %v1168_v23  ;;  %v1172_v24 = vmul.f32 0.5, %v1095_v21  ;;  %v1177_v61 = vmul.f32 0.5, %v1166_v52 }
 0x58a   :  { %1651 = vtanh.f32 %v1172_v24 }
 0x58b   :  { %1653 = vtanh.f32 %v1164_v20 }
 0x58c   :  { %1655 = vtanh.f32 %v1177_v61 }
 0x595   :  { %v1650_v58 = vpop.eup %1649 }
 0x596   :  { %v1170_v15 = vmul.f32 0.5, %v1650_v58 }
 0x597   :  { %v1652_v50 = vpop.eup %1651 }
 0x598   :  { %v1171_v51 = vadd.f32 0.5, %v1170_v15  ;;  %v1174_v16 = vmul.f32 0.5, %v1652_v50  ;;  %v1654_v25 = vpop.eup %1653 }
 0x599   :  { %v1656_v21 = vpop.eup %1655 }
 0x59a   :  { %v1175_v12 = vadd.f32 0.5, %v1174_v16  ;;  %v1182_v17 = vmul.f32 %v1654_v25, %v1171_v51  ;;  %v1179_v14 = vmul.f32 0.5, %v1656_v21  ;;  %v1586_v25 = vld [vmem:[%s3016_s0 + $0x38] sm:$0xff] }
 0x59c   :  { %v1181_v10 = vmul.f32 %v1175_v12, %v2788_v18  ;;  %v1180_v20 = vadd.f32 0.5, %v1179_v14  ;;  %v9_v12 = vstv %s3017_s3 }
 0x59d   :  { %10 = vst [vmem:[#allocation2] sm:$0x1] %v9_v12 }
 0x59e   :  { %v2928_v23 = vadd.f32 %v1182_v17, %v1181_v10  ;;  %v1380_v10 = vrot.slane %v1586_v25, %v3149_v63  ;;  %v1373_v17 = vcombine.high %v1586_v25, %v1586_v25 }
 0x5a0   :  { %1657 = vtanh.f32 %v2928_v23 }
 0x5ad   :  { %v1658_v8 = vpop.eup %1657 }
 0x5ae   :  { %v1185_v52 = vmul.f32 %v1658_v8, %v1180_v20 }
 0x5b0   :  { %1275 = vmatmul.mubr.f32.vlgmr.msra.gmra.mxu0 %v1185_v52  ;;  %1346 = vmatmul.mubr.f32.vlgmr.msra.gmra.mxu1 %v1185_v52  ;;  %v1387_v52 = vrot.slane %v1373_v17, %v3149_v63 }
 0x5b1   :  { %1395 = vmatpush1.msra.mxu0 %v2474_v62  ;;  %1466 = vmatpush1.msra.mxu1 %v2480_v3  ;;  %v3226_v62 = vld [vmem:[#allocation4_spill] sm:$0xff]  ;;  %v3227_v3 = vld [vmem:[#allocation5_spill] sm:$0xff] }
 0x5b2   :  { %1396 = vmatprep.subr.mxu0 %v2486_v60  ;;  %1467 = vmatprep.subr.mxu1 %v2492_v54  ;;  %v3228_v60 = vld [vmem:[#allocation8_spill] sm:$0xff]  ;;  %v3229_v54 = vld [vmem:[#allocation9_spill] sm:$0xff] }
 0x5b3   :  { %1397 = vmatpush1.msra.mxu0 %v2498_v56  ;;  %1468 = vmatpush1.msra.mxu1 %v2504_v53  ;;  %v3230_v56 = vld [vmem:[#allocation6_spill] sm:$0xff] }
 0x5b4   :  { %1398 = vmatprep.subr.mxu0 %v2510_v57  ;;  %1469 = vmatprep.subr.mxu1 %v2516_v48  ;;  %v3231_v53 = vld [vmem:[#allocation14_spill] sm:$0xff]  ;;  %v3233_v48 = vld [vmem:[#allocation11_spill] sm:$0xff] }
 0x5b5   :  { %1399 = vmatpush1.msra.mxu0 %v2522_v1  ;;  %1470 = vmatpush1.msra.mxu1 %v2528_v2  ;;  %v3232_v57 = vld [vmem:[#allocation10_spill] sm:$0xff]  ;;  %v3234_v1 = vld [vmem:[#allocation7_spill] sm:$0xff]  ;;  %v3235_v2 = vld [vmem:[#allocation16_spill] sm:$0xff] }
 0x5b6   :  { %1400 = vmatprep.subr.mxu0 %v2534_v4  ;;  %1471 = vmatprep.subr.mxu1 %v2540_v7  ;;  %v3236_v4 = vld [vmem:[#allocation12_spill] sm:$0xff]  ;;  %v3237_v7 = vld [vmem:[#allocation13_spill] sm:$0xff] }
 0x5b7   :  { %1401 = vmatpush1.msra.mxu0 %v2546_v9  ;;  %1472 = vmatpush1.msra.mxu1 %v2552_v11  ;;  %v3238_v9 = vld [vmem:[#allocation18_spill] sm:$0xff]  ;;  %v3239_v11 = vld [vmem:[#allocation15_spill] sm:$0xff] }
 0x5b8   :  { %1402 = vmatprep.subr.mxu0 %v2558_v13  ;;  %1473 = vmatprep.subr.mxu1 %v2564_v26  ;;  %v3240_v13 = vld [vmem:[#allocation20_spill] sm:$0xff]  ;;  %v3241_v26 = vld [vmem:[#allocation17_spill] sm:$0xff] }
 0x5b9   :  { %1403 = vmatpush1.msra.mxu0 %v2570_v27  ;;  %1474 = vmatpush1.msra.mxu1 %v2576_v28  ;;  %v3242_v27 = vld [vmem:[#allocation22_spill] sm:$0xff]  ;;  %v3243_v28 = vld [vmem:[#allocation19_spill] sm:$0xff] }
 0x5ba   :  { %1404 = vmatprep.subr.mxu0 %v2582_v29  ;;  %1475 = vmatprep.subr.mxu1 %v2588_v30  ;;  %v3244_v29 = vld [vmem:[#allocation23_spill] sm:$0xff]  ;;  %v3245_v30 = vmov 0.0  }
 0x5bb   :  { %1405 = vmatpush1.msra.mxu0 %v2594_v31  ;;  %1476 = vmatpush1.msra.mxu1 %v2600_v32  ;;  %v3246_v31 = vld [vmem:[#allocation21_spill] sm:$0xff] }
 0x5bc   :  { %1406 = vmatprep.subr.mxu0 %v2606_v33  ;;  %1477 = vmatprep.subr.mxu1 %v2612_v34  ;;  %v1585_v32 = vld [vmem:[%s3016_s0 + $0x30] sm:$0xff] }
 0x5bd   :  { %1407 = vmatpush1.msra.mxu0 %v2618_v35  ;;  %1478 = vmatpush1.msra.mxu1 %v2624_v36  ;;  %v1196_v33 = vrot.slane %v1585_v32, %v3149_v63  ;;  %v1189_v34 = vcombine.high %v1585_v32, %v1585_v32  ;;  %v1587_v32 = vld [vmem:[%s3018_s2] ss:$0 sm:$0xff] }
 0x5be   :  { %1408 = vmatprep.subr.mxu0 %v2630_v37  ;;  %1479 = vmatprep.subr.mxu1 %v2636_v38 }
 0x5bf   :  { %1409 = vmatpush1.msra.mxu0 %v2642_v39  ;;  %1480 = vmatpush1.msra.mxu1 %v2648_v40  ;;  %v1204_v35 = vcombine.high %v1196_v33, %v1196_v33  ;;  %v1203_v40 = vrot.slane %v1189_v34, %v3149_v63 }
 0x5c0   :  { %1410 = vmatprep.subr.mxu0 %v2654_v41  ;;  %1481 = vmatprep.subr.mxu1 %v2660_v42 }
 0x5c1   :  { %1411 = vmatpush1.msra.mxu0 %v2666_v44  ;;  %1482 = vmatpush1.msra.mxu1 %v2672_v46 }
 0x5c2   :  { %1412 = vmatprep.subr.mxu0 %v2678_v55  ;;  %1483 = vmatprep.subr.mxu1 %v2684_v43  ;;  %v1205_v55 = vcombine.high %v1203_v40, %v1203_v40 }
 0x5c3   :  { %1413 = vmatpush1.msra.mxu0 %v2690_v6  ;;  %1484 = vmatpush1.msra.mxu1 %v2696_v45 }
 0x5c4   :  { %1414 = vmatprep.subr.mxu0 %v2702_v47  ;;  %1485 = vmatprep.subr.mxu1 %v2708_v59 }
 0x5c5   :  { %1415 = vmatpush1.msra.mxu0 %v2714_v49  ;;  %1486 = vmatpush1.msra.mxu1 %v2720_v0 }
 0x5c6   :  { %1416 = vmatprep.subr.mxu0 %v3226_v62  ;;  %1487 = vmatprep.subr.mxu1 %v3227_v3 }
 0x5c7   :  { %1417 = vmatpush1.msra.mxu0 %v3228_v60  ;;  %1488 = vmatpush1.msra.mxu1 %v3229_v54 }
 0x5c8   :  { %1418 = vmatprep.subr.mxu0 %v3230_v56  ;;  %1489 = vmatprep.subr.mxu1 %v3231_v53  ;;  %v1389_v56 = vcombine.high %v1387_v52, %v1387_v52 }
 0x5c9   :  { %1419 = vmatpush1.msra.mxu0 %v3232_v57  ;;  %1490 = vmatpush1.msra.mxu1 %v3233_v48 }
 0x5ca   :  { %1420 = vmatprep.subr.mxu0 %v3234_v1  ;;  %1491 = vmatprep.subr.mxu1 %v3235_v2 }
 0x5cb   :  { %1421 = vmatpush1.msra.mxu0 %v3236_v4  ;;  %1492 = vmatpush1.msra.mxu1 %v3237_v7 }
 0x5cc   :  { %1422 = vmatprep.subr.mxu0 %v3238_v9  ;;  %1493 = vmatprep.subr.mxu1 %v3239_v11 }
 0x5cd   :  { %1423 = vmatpush1.msra.mxu0 %v3240_v13  ;;  %1494 = vmatpush1.msra.mxu1 %v3241_v26 }
 0x5ce   :  { %1424 = vmatprep.subr.mxu0 %v3242_v27  ;;  %1495 = vmatprep.subr.mxu1 %v3243_v28 }
 0x5cf   :  { %1425 = vmatpush1.msra.mxu0 %v3244_v29  ;;  %1458 = vmatprep.mubr.f32.mxu0 %v3245_v30 }
 0x5d0   :  { %1496 = vmatpush1.msra.mxu1 %v3246_v31  ;;  %1529 = vmatprep.mubr.f32.mxu1 %v3245_v30 }
 0x670   :  { %v1276_v36 = vpop.f32.mrf.mxu0  ;;  %v1347_v42 = vpop.f32.mrf.mxu1 }
 0x671   :  { %v1277_v37 = vadd.f32 %v1276_v36, %v1196_v33  ;;  %v1348_v46 = vadd.f32 %v1347_v42, %v1203_v40  ;;  %v1588_v36 = vld [vmem:[#allocation2] ss:$0 sm:$0xff] }
 0x672   :  { %v1278_v38 = vpop.f32.mrf.mxu0  ;;  %v1349_v43 = vpop.f32.mrf.mxu1 }
 0x673   :  { %v1352_v39 = vmul.f32 0.5, %v1277_v37  ;;  %v1279_v41 = vadd.f32 %v1278_v38, %v1204_v35  ;;  %v1350_v6 = vadd.f32 %v1349_v43, %v1205_v55 }
 0x675   :  { %1659 = vtanh.f32 %v1352_v39  ;;  %v1356_v44 = vmul.f32 0.5, %v1279_v41  ;;  %v1361_v45 = vmul.f32 0.5, %v1350_v6 }
 0x677   :  { %1661 = vtanh.f32 %v1356_v44 }
 0x678   :  { %1663 = vtanh.f32 %v1348_v46 }
 0x679   :  { %1665 = vtanh.f32 %v1361_v45 }
 0x682   :  { %v1660_v47 = vpop.eup %1659 }
 0x683   :  { %v1354_v59 = vmul.f32 0.5, %v1660_v47 }
 0x684   :  { %v1662_v49 = vpop.eup %1661 }
 0x685   :  { %v1355_v0 = vadd.f32 0.5, %v1354_v59  ;;  %v1358_v18 = vmul.f32 0.5, %v1662_v49  ;;  %v1664_v50 = vpop.eup %1663 }
 0x686   :  { %v1666_v5 = vpop.eup %1665 }
 0x687   :  { %v1359_v51 = vadd.f32 0.5, %v1358_v18  ;;  %v1366_v61 = vmul.f32 %v1664_v50, %v1355_v0  ;;  %v1363_v24 = vmul.f32 0.5, %v1666_v5 }
 0x689   :  { %v1365_v58 = vmul.f32 %v1359_v51, %v2928_v23  ;;  %v1364_v22 = vadd.f32 0.5, %v1363_v24  ;;  %v1388_v23 = vcombine.high %v1380_v10, %v1380_v10 }
 0x68b   :  { %v1367_v19 = vadd.f32 %v1366_v61, %v1365_v58 }
 0x68d   :  { %1667 = vtanh.f32 %v1367_v19 }
 0x69a   :  { %v1668_v15 = vpop.eup %1667 }
 0x69b   :  { %v1369_v16 = vmul.f32 %v1668_v15, %v1364_v22 }
 0x69d   :  { %1459 = vmatmul.mubr.f32.vlgmr.msra.gmra.mxu0 %v1369_v16  ;;  %1530 = vmatmul.mubr.f32.vlgmr.msra.gmra.mxu1 %v1369_v16 }
 0x75d   :  { %v1460_v21 = vpop.f32.mrf.mxu0  ;;  %v1531_v3 = vpop.f32.mrf.mxu1 }
 0x75e   :  { %v1461_v14 = vadd.f32 %v1460_v21, %v1380_v10  ;;  %v1532_v54 = vadd.f32 %v1531_v3, %v1387_v52 }
 0x75f   :  { %v1462_v20 = vpop.f32.mrf.mxu0  ;;  %v1533_v53 = vpop.f32.mrf.mxu1 }
 0x760   :  { %v1536_v8 = vmul.f32 0.5, %v1461_v14  ;;  %v1463_v62 = vadd.f32 %v1462_v20, %v1388_v23  ;;  %v1534_v57 = vadd.f32 %v1533_v53, %v1389_v56 }
 0x762   :  { %1669 = vtanh.f32 %v1536_v8  ;;  %v1540_v60 = vmul.f32 0.5, %v1463_v62  ;;  %v1545_v48 = vmul.f32 0.5, %v1534_v57 }
 0x764   :  { %1671 = vtanh.f32 %v1540_v60 }
 0x765   :  { %1673 = vtanh.f32 %v1532_v54 }
 0x766   :  { %1675 = vtanh.f32 %v1545_v48 }
 0x76f   :  { %v1670_v1 = vpop.eup %1669 }
 0x770   :  { %v1538_v2 = vmul.f32 0.5, %v1670_v1 }
 0x771   :  { %v1672_v4 = vpop.eup %1671 }
 0x772   :  { %v1539_v7 = vadd.f32 0.5, %v1538_v2  ;;  %v1542_v9 = vmul.f32 0.5, %v1672_v4  ;;  %v1674_v13 = vpop.eup %1673 }
 0x773   :  { %v1676_v28 = vpop.eup %1675 }
 0x774   :  { %v1543_v11 = vadd.f32 0.5, %v1542_v9  ;;  %v1550_v26 = vmul.f32 %v1674_v13, %v1539_v7  ;;  %v1547_v29 = vmul.f32 0.5, %v1676_v28 }
 0x776   :  { %v1549_v63 = vmul.f32 %v1543_v11, %v1367_v19  ;;  %v1548_v30 = vadd.f32 0.5, %v1547_v29 }
 0x778   :  { %v1551_v27 = vadd.f32 %v1550_v26, %v1549_v63 }
 0x77a   :  { %1677 = vtanh.f32 %v1551_v27 }
 0x787   :  { %v1678_v31 = vpop.eup %1677 }
 0x788   :  { %v1553_v33 = vmul.f32 %v1678_v31, %v1548_v30 }
 0x78a   :  { %v1561_v34 = vmul.f32 %v1587_v32, %v1553_v33 }
 0x78c   :  { %v1563_v35 = vsel %vm1562_vm0, %v1561_v34, 0.0 }
 0x78d   :  { %1564 = vadd.xlane.f32.xlu0 %v1563_v35 }
 0x816   :  { %v1565_v37 = vpop.xlane.xlu0 %1564 }
 0x817   :  { %v1573_v38 = vadd.f32 %v1588_v36, %v1565_v37 }
 0x819   :  { %1575 = vst.msk [vmem:[%s3019_s4] sm:$0x3] %vm1574_vm1, %v1573_v38 }

</bundles_post_ra>
